<compile_context>
chip_gen: v5e
topology: v5e:2x2
jax: 0.10.0
libtpu: 0.0.40
codegen_flags: <defaults>
</compile_context>

<pallas_src>
import functools

import jax
import jax.numpy as jnp
from jax import lax
from jax.experimental import pallas as pl
from jax.experimental.pallas import tpu as pltpu


# ---------------------------------------------------------------------------
# Pallas kernels.  All activations cross kernels in "CM" layout:
#   (C, M) with M = N*H*W on lanes, channels on sublanes.
# ---------------------------------------------------------------------------
def _elu(x):
    # ELU(alpha=1) in f32; exp arg clamped for safety.
    return jnp.where(x > 0, x, jnp.exp(jnp.minimum(x, 0.0)) - 1.0)


def _conv_mm_kernel(p_ref, w_ref, o_ref, *, act):
    # out(Cout, tm) = act( W(Cout, K+1) @ patches(K+1, tm) )   (bias = ones-row)
    acc = jnp.dot(w_ref[...], p_ref[...], preferred_element_type=jnp.float32)
    if act == "elu":
        acc = _elu(acc)
    o_ref[...] = acc.astype(o_ref.dtype)


def _rgb_attn_blend_kernel(p_ref, w_ref, comp_ref, o_ref):
    # Fused to_rgb + conv_attention + sigmoid(3a) blend.
    t = jnp.dot(w_ref[...], p_ref[...], preferred_element_type=jnp.float32)  # (4, tm)
    rgb = t[0:3, :]
    att = t[3:4, :]
    a = 1.0 / (1.0 + jnp.exp(-3.0 * att))
    o_ref[...] = (a * comp_ref[...] + (1.0 - a) * rgb).astype(o_ref.dtype)


# ---------------------------------------------------------------------------
# Pallas wrappers
# ---------------------------------------------------------------------------
def _tile_m(m):
    # >= 2 parallel lane-dense tiles whenever possible (v7x megacore); never
    # fall back to tiny tiles -- tails are handled by explicit zero padding.
    return 256 if m >= 512 else 128


def _matmul_cm(patches, wmat, act="none"):
    """out(Cout, M) = act(wmat @ [patches; ones]).  `wmat` carries the bias as
    its last column; bias is folded into the matmul via a ones-row."""
    k, m = patches.shape
    cout = wmat.shape[0]
    patches = jnp.concatenate([patches, jnp.ones((1, m), patches.dtype)], axis=0)
    kp = k + 1
    tm = _tile_m(m)
    mp = pl.cdiv(m, tm) * tm
    if mp != m:
        patches = jnp.pad(patches, ((0, 0), (0, mp - m)))

    out = pl.pallas_call(
        functools.partial(_conv_mm_kernel, act=act),
        out_shape=jax.ShapeDtypeStruct((cout, mp), jnp.float32),
        grid=(mp // tm,),
        in_specs=[
            pl.BlockSpec((kp, tm), lambda i: (0, i)),      # patches: lane-tiled
            pl.BlockSpec((cout, kp), lambda i: (0, 0)),    # weights: resident
        ],
        out_specs=pl.BlockSpec((cout, tm), lambda i: (0, i)),
        compiler_params=pltpu.CompilerParams(dimension_semantics=("parallel",)),
    )(patches.astype(jnp.bfloat16), wmat.astype(jnp.bfloat16))
    return out[:, :m] if mp != m else out


def rgb_attention_blend(hx, w_rgb, b_rgb, w_att, b_att, comp):
    """Fused to_rgb + conv_attention + sigmoid blend (single pallas_call)."""
    c, n, h, w = hx.shape
    m = n * h * w
    wr = jnp.concatenate([w_rgb.reshape(c, 3).T, b_rgb[:, None]], axis=1)   # (3, c+1)
    wa = jnp.concatenate([w_att.reshape(c, 1).T, b_att[:, None]], axis=1)   # (1, c+1)
    wmat = jnp.concatenate([wr, wa], axis=0)                                # (4, c+1)

    p = jnp.concatenate([hx.reshape(c, m), jnp.ones((1, m), hx.dtype)], axis=0)
    comp_f = comp.reshape(3, m)
    kp = c + 1
    tm = _tile_m(m)
    mp = pl.cdiv(m, tm) * tm
    if mp != m:
        p = jnp.pad(p, ((0, 0), (0, mp - m)))
        comp_f = jnp.pad(comp_f, ((0, 0), (0, mp - m)))

    out = pl.pallas_call(
        _rgb_attn_blend_kernel,
        out_shape=jax.ShapeDtypeStruct((3, mp), jnp.float32),
        grid=(mp // tm,),
        in_specs=[
            pl.BlockSpec((kp, tm), lambda i: (0, i)),
            pl.BlockSpec((4, kp), lambda i: (0, 0)),
            pl.BlockSpec((3, tm), lambda i: (0, i)),
        ],
        out_specs=pl.BlockSpec((3, tm), lambda i: (0, i)),
        compiler_params=pltpu.CompilerParams(dimension_semantics=("parallel",)),
    )(p.astype(jnp.bfloat16), wmat.astype(jnp.bfloat16), comp_f)
    if mp != m:
        out = out[:, :m]
    return out.reshape(3, n, h, w)


# ---------------------------------------------------------------------------
# Conv helpers (im2col glue in JAX, matmuls in Pallas).  Channel-first layout:
# activations are (C, N, H, W) so patches come out directly as (K, M).
# ---------------------------------------------------------------------------
def _im2col_cf(x, kh, kw, stride, pad):
    """x: (C, N, H, W) -> patches (kh*kw*C, N*Ho*Wo); K order = (tap, channel)."""
    c, n, h, w = x.shape
    xp = jnp.pad(x, ((0, 0), (0, 0), (pad, pad), (pad, pad)))
    ho = (h + 2 * pad - kh) // stride + 1
    wo = (w + 2 * pad - kw) // stride + 1
    taps = [xp[:, :, dy:dy + stride * ho:stride, dx:dx + stride * wo:stride]
            for dy in range(kh) for dx in range(kw)]
    patches = jnp.stack(taps, axis=0)                     # (T, C, N, Ho, Wo)
    return patches.reshape(kh * kw * c, n * ho * wo), (n, ho, wo)


def conv2d_cf(x, w, b, stride=1, pad=0, act="none"):
    """x: (Cin, N, H, W); w: (KH, KW, Cin, Cout) HWIO; b: (Cout,)."""
    kh, kw, cin, cout = w.shape
    patches, (n, ho, wo) = _im2col_cf(x, kh, kw, stride, pad)
    wmat = jnp.concatenate([w.reshape(kh * kw * cin, cout).T, b[:, None]], axis=1)
    out = _matmul_cm(patches, wmat, act=act)
    return out.reshape(cout, n, ho, wo)


def _deconv_phase_weight(w, b):
    """Build the 4-phase (sub-pixel) weight for ConvTranspose2d(k=4, s=2, p=1).
    `w` is the native transposed-conv weight stored as (4, 4, Cin, Cout) with
    out[2i - 1 + k] += x[i] * w[k].  Returns (4*Cout, 9*Cin + 1) acting on the
    3x3 / pad-1 im2col patches of the *un-dilated* input."""
    _, _, cin, cout = w.shape
    wph = jnp.zeros((2, 2, cout, 3, 3, cin), w.dtype)     # (py, px, co, dy, dx, ci)
    for py in range(2):
        for px in range(2):
            for dy in (py, py + 1):                       # padded row offsets
                for dx in (px, px + 1):                   # padded col offsets
                    ky = 3 + py - 2 * dy
                    kx = 3 + px - 2 * dx
                    wph = wph.at[py, px, :, dy, dx, :].set(w[ky, kx].T)
    wmat = wph.reshape(4 * cout, 9 * cin)
    bias4 = jnp.tile(b, 4)[:, None]
    return jnp.concatenate([wmat, bias4], axis=1)


def conv_transpose2d_cf_k4s2p1(x, w, b, act="elu"):
    """ConvTranspose2d(ks=4, stride=2, pad=1) via the 4-phase sub-pixel
    decomposition: one fused matmul on the un-dilated input + interleave."""
    cin, n, h, wi = x.shape
    cout = w.shape[3]
    patches, _ = _im2col_cf(x, 3, 3, 1, 1)                # (9*Cin, N*H*W)
    wmat = _deconv_phase_weight(w, b)                     # (4*Cout, 9*Cin + 1)
    out = _matmul_cm(patches, wmat, act=act)              # (4*Cout, N*H*W)
    out = out.reshape(2, 2, cout, n, h, wi)
    out = jnp.transpose(out, (2, 3, 4, 0, 5, 1))          # (Cout, N, H, 2, W, 2)
    return out.reshape(cout, n, 2 * h, 2 * wi)


def _block_diag_w(wa, wb):
    """Block-diagonal HWIO weight so two independent convs with the same spatial
    grid run as one matmul (stage-1 in_conv[0] + feat_conv[0] fusion)."""
    kh, kw, ca, oa = wa.shape
    _, _, cb, ob = wb.shape
    w = jnp.zeros((kh, kw, ca + cb, oa + ob), wa.dtype)
    w = w.at[:, :, :ca, :oa].set(wa)
    w = w.at[:, :, ca:, oa:].set(wb)
    return w


# ---------------------------------------------------------------------------
# Bilinear resize (PyTorch F.interpolate bilinear, align_corners=False) glue.
# ---------------------------------------------------------------------------
def _bilinear_resize_cf(x, out_h, out_w):
    c, n, h, w = x.shape
    if (h, w) == (out_h, out_w):
        return x

    def coords(insz, outsz):
        src = (jnp.arange(outsz, dtype=jnp.float32) + 0.5) * (insz / outsz) - 0.5
        src = jnp.maximum(src, 0.0)
        i0 = jnp.minimum(jnp.floor(src), insz - 1).astype(jnp.int32)
        i1 = jnp.minimum(i0 + 1, insz - 1)
        return i0, i1, src - i0.astype(jnp.float32)

    y0, y1, wy = coords(h, out_h)
    x0, x1, wx = coords(w, out_w)
    rows = (x[:, :, y0, :] * (1.0 - wy)[None, None, :, None]
            + x[:, :, y1, :] * wy[None, None, :, None])
    out = (rows[:, :, :, x0] * (1.0 - wx)[None, None, None, :]
           + rows[:, :, :, x1] * wx[None, None, None, :])
    return out


# ---------------------------------------------------------------------------
# Parameters (deterministic synthetic init; shapes per DBPNetv1.__init__).
# Deconv weights are stored in native transposed-conv semantics (KH, KW, Cin, Cout).
# ---------------------------------------------------------------------------
def init_params(key, in_channels=7, feat_in_channels=32, minf=24, depth=2,
                image_fusion=True):
    nhdf = 32
    out_channels = minf
    keys = iter(jax.random.split(key, 64))

    def wgt(shape, scale=0.05):
        return jax.random.normal(next(keys), shape, jnp.float32) * scale

    def bias(nc):
        return jax.random.normal(next(keys), (nc,), jnp.float32) * 0.01

    p = {}
    p["in_conv0_w"] = wgt((3, 3, in_channels, out_channels)); p["in_conv0_b"] = bias(out_channels)
    p["in_conv1_w"] = wgt((3, 3, out_channels, out_channels)); p["in_conv1_b"] = bias(out_channels)
    p["feat_conv0_w"] = wgt((3, 3, feat_in_channels, out_channels)); p["feat_conv0_b"] = bias(out_channels)
    p["feat_conv1_w"] = wgt((3, 3, out_channels, out_channels)); p["feat_conv1_b"] = bias(out_channels)

    out_chs = []
    for d in range(depth):
        oc = min(int(nhdf * 2 ** d), minf)
        out_chs.append(oc)
        p[f"hd{d}_down_w"] = wgt((4, 4, oc, oc)); p[f"hd{d}_down_b"] = bias(oc)
        p[f"hd{d}_up_w"] = wgt((4, 4, oc, oc)); p[f"hd{d}_up_b"] = bias(oc)
    for d in range(depth - 1):
        oc = out_chs[d]
        p[f"dd{d}_down_w"] = wgt((4, 4, oc, oc)); p[f"dd{d}_down_b"] = bias(oc)
        p[f"dd{d}_up_w"] = wgt((4, 4, oc, oc)); p[f"dd{d}_up_b"] = bias(oc)

    oc0 = out_chs[0]
    p["to_rgb_w"] = wgt((1, 1, oc0, 3)); p["to_rgb_b"] = bias(3)
    if image_fusion:
        p["attn_w"] = wgt((1, 1, oc0, 1)); p["attn_b"] = bias(1)
    return p


# ---------------------------------------------------------------------------
# DBPNetv1 forward (Pallas path)
# ---------------------------------------------------------------------------
def dbpnet_forward(params, lr_output, hr_mask, hr_comp, extra_feat,
                   lut_hr_output, target_resolution=(16, 16), depth=2,
                   image_fusion=False):
    th, tw = target_resolution
    to_cf = lambda t: jnp.transpose(t, (1, 0, 2, 3))       # NCHW -> (C, N, H, W)
    lr, mask, comp = to_cf(lr_output), to_cf(hr_mask), to_cf(hr_comp)
    feat, lut = to_cf(extra_feat), to_cf(lut_hr_output)

    up_output = _bilinear_resize_cf(lr, th, tw)
    feat_up = _bilinear_resize_cf(feat, th, tw)
    im_all = jnp.concatenate([up_output, lut, mask], axis=0)        # 7 channels

    p = params
    # --- stage 1 (fused): in_conv + feat_conv + add, 2 pallas_calls total ---
    x_cat = jnp.concatenate([im_all, feat_up], axis=0)              # (39, N, H, W)
    w0 = _block_diag_w(p["in_conv0_w"], p["feat_conv0_w"])          # (3,3,39,48)
    b0 = jnp.concatenate([p["in_conv0_b"], p["feat_conv0_b"]])
    af = conv2d_cf(x_cat, w0, b0, 1, 1, act="elu")                  # (48, N, H, W)
    w1 = jnp.concatenate([p["in_conv1_w"], p["feat_conv1_w"]], axis=2)  # (3,3,48,24)
    b1 = p["in_conv1_b"] + p["feat_conv1_b"]
    hx = conv2d_cf(af, w1, b1, 1, 1, act="none")                    # (24, N, H, W)

    # --- encoder: DBDownsample(4,2,1)+ELU ; DBUpsample(4,2,1)+ELU ---
    skips = []
    for d in range(depth):
        hd = conv2d_cf(hx, p[f"hd{d}_down_w"], p[f"hd{d}_down_b"], 2, 1, act="elu")
        hx = conv_transpose2d_cf_k4s2p1(hd, p[f"hd{d}_up_w"], p[f"hd{d}_up_b"],
                                        act="elu")
        skips.append(hx)

    # --- decoder: hddeconv_blocks[::-1] ---
    prev_out = skips.pop()
    for d in range(depth - 2, -1, -1):
        tgt = skips[-1]
        prev_out = _bilinear_resize_cf(prev_out, tgt.shape[2], tgt.shape[3])
        skip = skips.pop()
        block_in = prev_out + skip
        hd = conv2d_cf(block_in, p[f"dd{d}_down_w"], p[f"dd{d}_down_b"], 2, 1,
                       act="elu")
        prev_out = conv_transpose2d_cf_k4s2p1(hd, p[f"dd{d}_up_w"],
                                              p[f"dd{d}_up_b"], act="elu")
    hx = prev_out

    # --- head: fused to_rgb + attention + blend (or plain to_rgb) ---
    if image_fusion:
        out = rgb_attention_blend(hx, p["to_rgb_w"], p["to_rgb_b"],
                                  p["attn_w"], p["attn_b"], comp)
    else:
        out = conv2d_cf(hx, p["to_rgb_w"], p["to_rgb_b"], 1, 0, act="none")
    return jnp.transpose(out, (1, 0, 2, 3))                         # back to NCHW


# ---------------------------------------------------------------------------
# Pure-JAX reference (lax.conv based) with matched bf16 operand quantization,
# used only for the in-script correctness check.
# ---------------------------------------------------------------------------
def _ref_conv(x, w, b, stride=1, pad=0):
    y = lax.conv_general_dilated(
        x.astype(jnp.bfloat16),
        jnp.transpose(w, (3, 2, 0, 1)).astype(jnp.bfloat16),
        (stride, stride), ((pad, pad), (pad, pad)),
        dimension_numbers=("NCHW", "OIHW", "NCHW"),
        preferred_element_type=jnp.float32)
    return y + b[None, :, None, None]


def _ref_deconv(x, w, b):
    r = jnp.transpose(w[::-1, ::-1, :, :], (3, 2, 0, 1))
    y = lax.conv_general_dilated(
        x.astype(jnp.bfloat16), r.astype(jnp.bfloat16),
        (1, 1), ((2, 2), (2, 2)), lhs_dilation=(2, 2),
        dimension_numbers=("NCHW", "OIHW", "NCHW"),
        preferred_element_type=jnp.float32)
    return y + b[None, :, None, None]


def _ref_bilinear_nchw(x, th, tw):
    return jnp.transpose(_bilinear_resize_cf(jnp.transpose(x, (1, 0, 2, 3)), th, tw),
                         (1, 0, 2, 3))


def dbpnet_forward_ref(params, lr_output, hr_mask, hr_comp, extra_feat,
                       lut_hr_output, target_resolution=(16, 16), depth=2,
                       image_fusion=False):
    th, tw = target_resolution
    elu = jax.nn.elu
    p = params
    up_output = _ref_bilinear_nchw(lr_output, th, tw)
    feat_up = _ref_bilinear_nchw(extra_feat, th, tw)
    im_all = jnp.concatenate([up_output, lut_hr_output, hr_mask], axis=1)

    a = _ref_conv(elu(_ref_conv(im_all, p["in_conv0_w"], p["in_conv0_b"], 1, 1)),
                  p["in_conv1_w"], p["in_conv1_b"], 1, 1)
    f = _ref_conv(elu(_ref_conv(feat_up, p["feat_conv0_w"], p["feat_conv0_b"], 1, 1)),
                  p["feat_conv1_w"], p["feat_conv1_b"], 1, 1)
    hx = a + f

    skips = []
    for d in range(depth):
        hd = elu(_ref_conv(hx, p[f"hd{d}_down_w"], p[f"hd{d}_down_b"], 2, 1))
        hx = elu(_ref_deconv(hd, p[f"hd{d}_up_w"], p[f"hd{d}_up_b"]))
        skips.append(hx)
    prev_out = skips.pop()
    for d in range(depth - 2, -1, -1):
        tgt = skips[-1]
        prev_out = _ref_bilinear_nchw(prev_out, tgt.shape[2], tgt.shape[3])
        skip = skips.pop()
        block_in = prev_out + skip
        hd = elu(_ref_conv(block_in, p[f"dd{d}_down_w"], p[f"dd{d}_down_b"], 2, 1))
        prev_out = elu(_ref_deconv(hd, p[f"dd{d}_up_w"], p[f"dd{d}_up_b"]))
    hx = prev_out

    rgb = _ref_conv(hx, p["to_rgb_w"], p["to_rgb_b"], 1, 0)
    if image_fusion:
        att = jax.nn.sigmoid(3.0 * _ref_conv(hx, p["attn_w"], p["attn_b"], 1, 0))
        return att * hr_comp + (1.0 - att) * rgb
    return rgb


# ---------------------------------------------------------------------------
if __name__ == "__main__":
    N, TH, TW = 2, 16, 16
    key = jax.random.PRNGKey(0)
    k = jax.random.split(key, 6)
    lr_output = jax.random.normal(k[0], (N, 3, 8, 8), jnp.float32)
    hr_mask = (jax.random.uniform(k[1], (N, 1, TH, TW)) > 0.5).astype(jnp.float32)
    hr_comp = jax.random.normal(k[2], (N, 3, TH, TW), jnp.float32)
    extra_feat = jax.random.normal(k[3], (N, 32, 8, 8), jnp.float32)
    lut_hr_output = jax.random.normal(k[4], (N, 3, TH, TW), jnp.float32)

    params = init_params(jax.random.PRNGKey(42), image_fusion=True)

    fwd_plain = jax.jit(functools.partial(dbpnet_forward,
                                          target_resolution=(TH, TW),
                                          image_fusion=False))
    fwd_fused = jax.jit(functools.partial(dbpnet_forward,
                                          target_resolution=(TH, TW),
                                          image_fusion=True))

    out_plain = jax.block_until_ready(
        fwd_plain(params, lr_output, hr_mask, hr_comp, extra_feat, lut_hr_output))
    out_fused = jax.block_until_ready(
        fwd_fused(params, lr_output, hr_mask, hr_comp, extra_feat, lut_hr_output))

    ref_plain = dbpnet_forward_ref(params, lr_output, hr_mask, hr_comp, extra_feat,
                                   lut_hr_output, target_resolution=(TH, TW),
                                   image_fusion=False)
    ref_fused = dbpnet_forward_ref(params, lr_output, hr_mask, hr_comp, extra_feat,
                                   lut_hr_output, target_resolution=(TH, TW),
                                   image_fusion=True)

    assert out_plain.shape == (N, 3, TH, TW), out_plain.shape
    assert out_fused.shape == (N, 3, TH, TW), out_fused.shape
    assert bool(jnp.all(jnp.isfinite(out_plain)))
    assert bool(jnp.all(jnp.isfinite(out_fused)))
    err_p = float(jnp.max(jnp.abs(out_plain - ref_plain)))
    err_f = float(jnp.max(jnp.abs(out_fused - ref_fused)))
    assert err_p < 2e-2 and err_f < 2e-2, (err_p, err_f)
    print("KERNEL_OK")
</pallas_src>

<mosaic_0001>
module attributes {stable_mosaic.version = 11 : i64} {
  func.func @_conv_mm_kernel(%arg0: i32, %arg1: memref<352x256xbf16, #tpu.memory_space<vmem>>, %arg2: memref<48x352xbf16, #tpu.memory_space<vmem>>, %arg3: memref<48x256xf32, #tpu.memory_space<vmem>>) attributes {dimension_semantics = [#tpu.dimension_semantics<parallel>], iteration_bounds = array<i64: 2>, scalar_prefetch = 0 : i64, scratch_operands = 0 : i64, tpu.core_type = #tpu.core_type<tc>, window_params = [{transform_indices = @transform_0, window_bounds = array<i64: 352, 256>}, {pipeline_mode = #tpu.pipeline_mode<synchronous>, transform_indices = @transform_1, window_bounds = array<i64: 48, 352>}, {transform_indices = @transform_2, window_bounds = array<i64: 48, 256>}]} {
    %c0 = arith.constant 0 : index
    %c0_0 = arith.constant 0 : index
    %0 = vector.load %arg2[%c0, %c0_0] : memref<48x352xbf16, #tpu.memory_space<vmem>>, vector<48x352xbf16>
    %c0_1 = arith.constant 0 : index
    %c0_2 = arith.constant 0 : index
    %1 = vector.load %arg1[%c0_1, %c0_2] : memref<352x256xbf16, #tpu.memory_space<vmem>>, vector<352x256xbf16>
    %cst = arith.constant dense<0.000000e+00> : vector<48x256xf32>
    %2 = tpu.matmul %0, %1, %cst {dimension_numbers = #tpu.dot_dimension_numbers<[1], [0], [0], [1], [0, 0, 1, 1], [], []>} : vector<48x352xbf16>, vector<352x256xbf16>, vector<48x256xf32> -> vector<48x256xf32>
    %cst_3 = arith.constant 0.000000e+00 : f32
    %3 = vector.broadcast %cst_3 : f32 to vector<48x256xf32>
    %4 = arith.cmpf ogt, %2, %3 : vector<48x256xf32>
    %cst_4 = arith.constant 0.000000e+00 : f32
    %5 = vector.broadcast %cst_4 : f32 to vector<48x256xf32>
    %6 = arith.minimumf %2, %5 : vector<48x256xf32>
    %7 = math.exp %6 : vector<48x256xf32>
    %cst_5 = arith.constant 1.000000e+00 : f32
    %8 = vector.broadcast %cst_5 : f32 to vector<48x256xf32>
    %9 = arith.subf %7, %8 : vector<48x256xf32>
    %10 = arith.select %4, %2, %9 : vector<48x256xi1>, vector<48x256xf32>
    %c0_6 = arith.constant 0 : index
    %c0_7 = arith.constant 0 : index
    %11 = vector.load %arg3[%c0_6, %c0_7] : memref<48x256xf32, #tpu.memory_space<vmem>>, vector<48x256xf32>
    tpu.vector_store %arg3[%c0_6, %c0_7], %10 {strides = array<i32>} : memref<48x256xf32, #tpu.memory_space<vmem>>, vector<48x256xf32>,
    return
  }
  func.func @transform_0(%arg0: i32) -> (i32, i32) {
    %c0_i32 = arith.constant 0 : i32
    %c0_i32_0 = arith.constant 0 : i32
    return %c0_i32, %arg0 : i32, i32
  }
  func.func @transform_1(%arg0: i32) -> (i32, i32) {
    %c0_i32 = arith.constant 0 : i32
    %c0_i32_0 = arith.constant 0 : i32
    %c0_i32_1 = arith.constant 0 : i32
    return %c0_i32, %c0_i32_0 : i32, i32
  }
  func.func @transform_2(%arg0: i32) -> (i32, i32) {
    %c0_i32 = arith.constant 0 : i32
    %c0_i32_0 = arith.constant 0 : i32
    return %c0_i32, %arg0 : i32, i32
  }
}

module attributes {stable_mosaic.version = 11 : i64} {
  func.func @_conv_mm_kernel(%arg0: i32, %arg1: memref<433x256xbf16, #tpu.memory_space<vmem>>, %arg2: memref<24x433xbf16, #tpu.memory_space<vmem>>, %arg3: memref<24x256xf32, #tpu.memory_space<vmem>>) attributes {dimension_semantics = [#tpu.dimension_semantics<parallel>], iteration_bounds = array<i64: 2>, scalar_prefetch = 0 : i64, scratch_operands = 0 : i64, tpu.core_type = #tpu.core_type<tc>, window_params = [{transform_indices = @transform_0, window_bounds = array<i64: 433, 256>}, {pipeline_mode = #tpu.pipeline_mode<synchronous>, transform_indices = @transform_1, window_bounds = array<i64: 24, 433>}, {transform_indices = @transform_2, window_bounds = array<i64: 24, 256>}]} {
    %c0 = arith.constant 0 : index
    %c0_0 = arith.constant 0 : index
    %0 = vector.load %arg2[%c0, %c0_0] : memref<24x433xbf16, #tpu.memory_space<vmem>>, vector<24x433xbf16>
    %c0_1 = arith.constant 0 : index
    %c0_2 = arith.constant 0 : index
    %1 = vector.load %arg1[%c0_1, %c0_2] : memref<433x256xbf16, #tpu.memory_space<vmem>>, vector<433x256xbf16>
    %cst = arith.constant dense<0.000000e+00> : vector<24x256xf32>
    %2 = tpu.matmul %0, %1, %cst {dimension_numbers = #tpu.dot_dimension_numbers<[1], [0], [0], [1], [0, 0, 1, 1], [], []>} : vector<24x433xbf16>, vector<433x256xbf16>, vector<24x256xf32> -> vector<24x256xf32>
    %c0_3 = arith.constant 0 : index
    %c0_4 = arith.constant 0 : index
    %3 = vector.load %arg3[%c0_3, %c0_4] : memref<24x256xf32, #tpu.memory_space<vmem>>, vector<24x256xf32>
    tpu.vector_store %arg3[%c0_3, %c0_4], %2 {strides = array<i32>} : memref<24x256xf32, #tpu.memory_space<vmem>>, vector<24x256xf32>,
    return
  }
  func.func @transform_0(%arg0: i32) -> (i32, i32) {
    %c0_i32 = arith.constant 0 : i32
    %c0_i32_0 = arith.constant 0 : i32
    return %c0_i32, %arg0 : i32, i32
  }
  func.func @transform_1(%arg0: i32) -> (i32, i32) {
    %c0_i32 = arith.constant 0 : i32
    %c0_i32_0 = arith.constant 0 : i32
    %c0_i32_1 = arith.constant 0 : i32
    return %c0_i32, %c0_i32_0 : i32, i32
  }
  func.func @transform_2(%arg0: i32) -> (i32, i32) {
    %c0_i32 = arith.constant 0 : i32
    %c0_i32_0 = arith.constant 0 : i32
    return %c0_i32, %arg0 : i32, i32
  }
}

module attributes {stable_mosaic.version = 11 : i64} {
  func.func @_conv_mm_kernel(%arg0: i32, %arg1: memref<385x128xbf16, #tpu.memory_space<vmem>>, %arg2: memref<24x385xbf16, #tpu.memory_space<vmem>>, %arg3: memref<24x128xf32, #tpu.memory_space<vmem>>) attributes {dimension_semantics = [#tpu.dimension_semantics<parallel>], iteration_bounds = array<i64: 1>, scalar_prefetch = 0 : i64, scratch_operands = 0 : i64, tpu.core_type = #tpu.core_type<tc>, window_params = [{transform_indices = @transform_0, window_bounds = array<i64: 385, 128>}, {pipeline_mode = #tpu.pipeline_mode<synchronous>, transform_indices = @transform_1, window_bounds = array<i64: 24, 385>}, {transform_indices = @transform_2, window_bounds = array<i64: 24, 128>}]} {
    %c0 = arith.constant 0 : index
    %c0_0 = arith.constant 0 : index
    %0 = vector.load %arg2[%c0, %c0_0] : memref<24x385xbf16, #tpu.memory_space<vmem>>, vector<24x385xbf16>
    %c0_1 = arith.constant 0 : index
    %c0_2 = arith.constant 0 : index
    %1 = vector.load %arg1[%c0_1, %c0_2] : memref<385x128xbf16, #tpu.memory_space<vmem>>, vector<385x128xbf16>
    %cst = arith.constant dense<0.000000e+00> : vector<24x128xf32>
    %2 = tpu.matmul %0, %1, %cst {dimension_numbers = #tpu.dot_dimension_numbers<[1], [0], [0], [1], [0, 0, 1, 1], [], []>} : vector<24x385xbf16>, vector<385x128xbf16>, vector<24x128xf32> -> vector<24x128xf32>
    %cst_3 = arith.constant 0.000000e+00 : f32
    %3 = vector.broadcast %cst_3 : f32 to vector<24x128xf32>
    %4 = arith.cmpf ogt, %2, %3 : vector<24x128xf32>
    %cst_4 = arith.constant 0.000000e+00 : f32
    %5 = vector.broadcast %cst_4 : f32 to vector<24x128xf32>
    %6 = arith.minimumf %2, %5 : vector<24x128xf32>
    %7 = math.exp %6 : vector<24x128xf32>
    %cst_5 = arith.constant 1.000000e+00 : f32
    %8 = vector.broadcast %cst_5 : f32 to vector<24x128xf32>
    %9 = arith.subf %7, %8 : vector<24x128xf32>
    %10 = arith.select %4, %2, %9 : vector<24x128xi1>, vector<24x128xf32>
    %c0_6 = arith.constant 0 : index
    %c0_7 = arith.constant 0 : index
    %11 = vector.load %arg3[%c0_6, %c0_7] : memref<24x128xf32, #tpu.memory_space<vmem>>, vector<24x128xf32>
    tpu.vector_store %arg3[%c0_6, %c0_7], %10 {strides = array<i32>} : memref<24x128xf32, #tpu.memory_space<vmem>>, vector<24x128xf32>,
    return
  }
  func.func @transform_0(%arg0: i32) -> (i32, i32) {
    %c0_i32 = arith.constant 0 : i32
    %c0_i32_0 = arith.constant 0 : i32
    return %c0_i32, %arg0 : i32, i32
  }
  func.func @transform_1(%arg0: i32) -> (i32, i32) {
    %c0_i32 = arith.constant 0 : i32
    %c0_i32_0 = arith.constant 0 : i32
    %c0_i32_1 = arith.constant 0 : i32
    return %c0_i32, %c0_i32_0 : i32, i32
  }
  func.func @transform_2(%arg0: i32) -> (i32, i32) {
    %c0_i32 = arith.constant 0 : i32
    %c0_i32_0 = arith.constant 0 : i32
    return %c0_i32, %arg0 : i32, i32
  }
}

module attributes {stable_mosaic.version = 11 : i64} {
  func.func @_conv_mm_kernel(%arg0: i32, %arg1: memref<217x128xbf16, #tpu.memory_space<vmem>>, %arg2: memref<96x217xbf16, #tpu.memory_space<vmem>>, %arg3: memref<96x128xf32, #tpu.memory_space<vmem>>) attributes {dimension_semantics = [#tpu.dimension_semantics<parallel>], iteration_bounds = array<i64: 1>, scalar_prefetch = 0 : i64, scratch_operands = 0 : i64, tpu.core_type = #tpu.core_type<tc>, window_params = [{transform_indices = @transform_0, window_bounds = array<i64: 217, 128>}, {pipeline_mode = #tpu.pipeline_mode<synchronous>, transform_indices = @transform_1, window_bounds = array<i64: 96, 217>}, {transform_indices = @transform_2, window_bounds = array<i64: 96, 128>}]} {
    %c0 = arith.constant 0 : index
    %c0_0 = arith.constant 0 : index
    %0 = vector.load %arg2[%c0, %c0_0] : memref<96x217xbf16, #tpu.memory_space<vmem>>, vector<96x217xbf16>
    %c0_1 = arith.constant 0 : index
    %c0_2 = arith.constant 0 : index
    %1 = vector.load %arg1[%c0_1, %c0_2] : memref<217x128xbf16, #tpu.memory_space<vmem>>, vector<217x128xbf16>
    %cst = arith.constant dense<0.000000e+00> : vector<96x128xf32>
    %2 = tpu.matmul %0, %1, %cst {dimension_numbers = #tpu.dot_dimension_numbers<[1], [0], [0], [1], [0, 0, 1, 1], [], []>} : vector<96x217xbf16>, vector<217x128xbf16>, vector<96x128xf32> -> vector<96x128xf32>
    %cst_3 = arith.constant 0.000000e+00 : f32
    %3 = vector.broadcast %cst_3 : f32 to vector<96x128xf32>
    %4 = arith.cmpf ogt, %2, %3 : vector<96x128xf32>
    %cst_4 = arith.constant 0.000000e+00 : f32
    %5 = vector.broadcast %cst_4 : f32 to vector<96x128xf32>
    %6 = arith.minimumf %2, %5 : vector<96x128xf32>
    %7 = math.exp %6 : vector<96x128xf32>
    %cst_5 = arith.constant 1.000000e+00 : f32
    %8 = vector.broadcast %cst_5 : f32 to vector<96x128xf32>
    %9 = arith.subf %7, %8 : vector<96x128xf32>
    %10 = arith.select %4, %2, %9 : vector<96x128xi1>, vector<96x128xf32>
    %c0_6 = arith.constant 0 : index
    %c0_7 = arith.constant 0 : index
    %11 = vector.load %arg3[%c0_6, %c0_7] : memref<96x128xf32, #tpu.memory_space<vmem>>, vector<96x128xf32>
    tpu.vector_store %arg3[%c0_6, %c0_7], %10 {strides = array<i32>} : memref<96x128xf32, #tpu.memory_space<vmem>>, vector<96x128xf32>,
    return
  }
  func.func @transform_0(%arg0: i32) -> (i32, i32) {
    %c0_i32 = arith.constant 0 : i32
    %c0_i32_0 = arith.constant 0 : i32
    return %c0_i32, %arg0 : i32, i32
  }
  func.func @transform_1(%arg0: i32) -> (i32, i32) {
    %c0_i32 = arith.constant 0 : i32
    %c0_i32_0 = arith.constant 0 : i32
    %c0_i32_1 = arith.constant 0 : i32
    return %c0_i32, %c0_i32_0 : i32, i32
  }
  func.func @transform_2(%arg0: i32) -> (i32, i32) {
    %c0_i32 = arith.constant 0 : i32
    %c0_i32_0 = arith.constant 0 : i32
    return %c0_i32, %arg0 : i32, i32
  }
}

module attributes {stable_mosaic.version = 11 : i64} {
  func.func @_conv_mm_kernel(%arg0: i32, %arg1: memref<25x256xbf16, #tpu.memory_space<vmem>>, %arg2: memref<3x25xbf16, #tpu.memory_space<vmem>>, %arg3: memref<3x256xf32, #tpu.memory_space<vmem>>) attributes {dimension_semantics = [#tpu.dimension_semantics<parallel>], iteration_bounds = array<i64: 2>, scalar_prefetch = 0 : i64, scratch_operands = 0 : i64, tpu.core_type = #tpu.core_type<tc>, window_params = [{transform_indices = @transform_0, window_bounds = array<i64: 25, 256>}, {pipeline_mode = #tpu.pipeline_mode<synchronous>, transform_indices = @transform_1, window_bounds = array<i64: 3, 25>}, {transform_indices = @transform_2, window_bounds = array<i64: 3, 256>}]} {
    %c0 = arith.constant 0 : index
    %c0_0 = arith.constant 0 : index
    %0 = vector.load %arg2[%c0, %c0_0] : memref<3x25xbf16, #tpu.memory_space<vmem>>, vector<3x25xbf16>
    %c0_1 = arith.constant 0 : index
    %c0_2 = arith.constant 0 : index
    %1 = vector.load %arg1[%c0_1, %c0_2] : memref<25x256xbf16, #tpu.memory_space<vmem>>, vector<25x256xbf16>
    %cst = arith.constant dense<0.000000e+00> : vector<3x256xf32>
    %2 = tpu.matmul %0, %1, %cst {dimension_numbers = #tpu.dot_dimension_numbers<[1], [0], [0], [1], [0, 0, 1, 1], [], []>} : vector<3x25xbf16>, vector<25x256xbf16>, vector<3x256xf32> -> vector<3x256xf32>
    %c0_3 = arith.constant 0 : index
    %c0_4 = arith.constant 0 : index
    %3 = vector.load %arg3[%c0_3, %c0_4] : memref<3x256xf32, #tpu.memory_space<vmem>>, vector<3x256xf32>
    tpu.vector_store %arg3[%c0_3, %c0_4], %2 {strides = array<i32>} : memref<3x256xf32, #tpu.memory_space<vmem>>, vector<3x256xf32>,
    return
  }
  func.func @transform_0(%arg0: i32) -> (i32, i32) {
    %c0_i32 = arith.constant 0 : i32
    %c0_i32_0 = arith.constant 0 : i32
    return %c0_i32, %arg0 : i32, i32
  }
  func.func @transform_1(%arg0: i32) -> (i32, i32) {
    %c0_i32 = arith.constant 0 : i32
    %c0_i32_0 = arith.constant 0 : i32
    %c0_i32_1 = arith.constant 0 : i32
    return %c0_i32, %c0_i32_0 : i32, i32
  }
  func.func @transform_2(%arg0: i32) -> (i32, i32) {
    %c0_i32 = arith.constant 0 : i32
    %c0_i32_0 = arith.constant 0 : i32
    return %c0_i32, %arg0 : i32, i32
  }
}

</mosaic_0001>

<bundles_post_ra>
// kernel: dbpnet_forward.9
= control target key start
LH: loop header
LB: loop body
LE: loop exit
PB: predicated region body
PF: predicated region fallthrough
CT: control target
= control target key end

     0   :  { %s1413_s9 = smov 0   ;;  %s1415_s10 = smov 0   ;;  %s1780_s0 = inlined_call_operand.vmem [shape: bf16[352,512], index: 0, kind: input, shape index: {}]   ;;  %s1781_s1 = inlined_call_operand.vmem [shape: bf16[48,352], index: 1, kind: input, shape index: {}]   ;;  %s1782_s2 = inlined_call_operand.vmem [shape: f32[48,512], index: 2, kind: output, shape index: {}]  }
   0x1   :  { %s1417_s11 = smov 0  }
   0x2 LB: > { %s1013_s12 = sadd.s32 4294967295, %s1396_s11   ;;  %s1430_s13 = sadd.s32 1, %s1396_s11   ;;  %s1396_s11 = sphi %s1417_s11, %s1786_s11   ;;  %s1392_s10 = sphi %s1415_s10, %s1785_s10   ;;  %s1388_s9 = sphi %s1413_s9, %s1784_s9  }
   0x3   : > { %s16_s14 = ssub.s32 %s1396_s11, %s1430_s13  ;;  %s19_s15 = sadd.s32 1, %s1392_s10 }
   0x4   : > { %p17_p0 = scmp.eq.s32.totalorder %s16_s14, 0  ;;  %p26_p1 = scmp.ne.s32.totalorder %s1392_s10, %s1388_s9 }
   0x5   : > { %p27_p2 = scmp.eq.s32.totalorder %s1396_s11, 0  ;;  %p77_p3 = scmp.eq.s32.totalorder %s1013_s12, 1 }
   0x6   : > { %s1441_s16 = scalar_select %p17_p0, %s1392_s10, %s19_s15  }
   0x7   : > { %p28_p4 = por %p27_p2, %p26_p1  ;;  %p1443_p5 = por %p77_p3, %p26_p1 }
   0x8   : > { %p1016_p6 = scmp.ge.s32.totalorder %s1396_s11, 2 }
   0xa   : > { %102 = sbr.rel (%p1016_p6) target bundleno = 63 (0x3f), region = 20 }
   0xf   : > { %105 = sbr.rel (!%p28_p4) target bundleno = 63 (0x3f), region = 24  ;;  %s107_s18 = sand.u32 (%p28_p4), 1, %s1392_s10  }
  0x10   : > { %s1254_s19 = sshll.u32 (%p28_p4), %s1396_s11, 3  ;;  %s1323_s20 = smul.u32 (%p28_p4), 352, %s107_s18 }
  0x11   : > { %s1453_s23 = scalar_lea.vmem (%p28_p4), %s1780_s0, %s1254_s19 }
  0x12   : > { %v227_v0 = vld [vmem:[%s1453_s23] sm:$0xff] (%p28_p4)  ;;  %v229_v1 = vld [vmem:[%s1453_s23 + $0x10] sm:$0xff] (%p28_p4)  ;;  %s1458_s24 = scalar_lea.vmem (%p28_p4), [#allocation2], %s1323_s20 }
  0x13   : > { %v231_v2 = vld [vmem:[%s1453_s23 + $0x20] sm:$0xff] (%p28_p4)  ;;  %228 = vst [vmem:[%s1458_s24] sm:$0xff] (%p28_p4), %v227_v0  ;;  %v233_v3 = vld [vmem:[%s1453_s23 + $0x30] sm:$0xff] (%p28_p4) }
  0x14   : > { %230 = vst [vmem:[%s1458_s24 + $0x8] sm:$0xff] %v229_v1  ;;  %v235_v4 = vld [vmem:[%s1453_s23 + $0x40] sm:$0xff]  ;;  %v237_v5 = vld [vmem:[%s1453_s23 + $0x50] sm:$0xff] }
  0x15   : > { %232 = vst [vmem:[%s1458_s24 + $0x10] sm:$0xff] %v231_v2  ;;  %v239_v6 = vld [vmem:[%s1453_s23 + $0x60] sm:$0xff]  ;;  %v241_v7 = vld [vmem:[%s1453_s23 + $0x70] sm:$0xff] }
  0x16   : > { %234 = vst [vmem:[%s1458_s24 + $0x18] sm:$0xff] %v233_v3  ;;  %v243_v8 = vld [vmem:[%s1453_s23 + $0x80] sm:$0xff]  ;;  %v245_v9 = vld [vmem:[%s1453_s23 + $0x90] sm:$0xff] }
  0x17   : > { %236 = vst [vmem:[%s1458_s24 + $0x20] sm:$0xff] %v235_v4  ;;  %v247_v10 = vld [vmem:[%s1453_s23 + $0xa0] sm:$0xff]  ;;  %v249_v11 = vld [vmem:[%s1453_s23 + $0xb0] sm:$0xff] }
  0x18   : > { %238 = vst [vmem:[%s1458_s24 + $0x28] sm:$0xff] %v237_v5  ;;  %v251_v12 = vld [vmem:[%s1453_s23 + $0xc0] sm:$0xff]  ;;  %v253_v13 = vld [vmem:[%s1453_s23 + $0xd0] sm:$0xff] }
  0x19   : > { %240 = vst [vmem:[%s1458_s24 + $0x30] sm:$0xff] %v239_v6  ;;  %v255_v14 = vld [vmem:[%s1453_s23 + $0xe0] sm:$0xff]  ;;  %v257_v15 = vld [vmem:[%s1453_s23 + $0xf0] sm:$0xff] }
  0x1a   : > { %242 = vst [vmem:[%s1458_s24 + $0x38] sm:$0xff] %v241_v7  ;;  %v259_v16 = vld [vmem:[%s1453_s23 + $0x100] sm:$0xff]  ;;  %v261_v17 = vld [vmem:[%s1453_s23 + $0x110] sm:$0xff] }
  0x1b   : > { %244 = vst [vmem:[%s1458_s24 + $0x40] sm:$0xff] %v243_v8  ;;  %v263_v18 = vld [vmem:[%s1453_s23 + $0x120] sm:$0xff]  ;;  %v265_v19 = vld [vmem:[%s1453_s23 + $0x130] sm:$0xff] }
  0x1c   : > { %246 = vst [vmem:[%s1458_s24 + $0x48] sm:$0xff] %v245_v9  ;;  %v267_v20 = vld [vmem:[%s1453_s23 + $0x140] sm:$0xff]  ;;  %v269_v21 = vld [vmem:[%s1453_s23 + $0x150] sm:$0xff] }
  0x1d   : > { %248 = vst [vmem:[%s1458_s24 + $0x50] sm:$0xff] %v247_v10  ;;  %v271_v22 = vld [vmem:[%s1453_s23 + $0x160] sm:$0xff]  ;;  %v273_v23 = vld [vmem:[%s1453_s23 + $0x170] sm:$0xff] }
  0x1e   : > { %250 = vst [vmem:[%s1458_s24 + $0x58] sm:$0xff] %v249_v11  ;;  %v275_v24 = vld [vmem:[%s1453_s23 + $0x180] sm:$0xff]  ;;  %v277_v25 = vld [vmem:[%s1453_s23 + $0x190] sm:$0xff] }
  0x1f   : > { %252 = vst [vmem:[%s1458_s24 + $0x60] sm:$0xff] %v251_v12  ;;  %v279_v26 = vld [vmem:[%s1453_s23 + $0x1a0] sm:$0xff]  ;;  %v281_v27 = vld [vmem:[%s1453_s23 + $0x1b0] sm:$0xff] }
  0x20   : > { %254 = vst [vmem:[%s1458_s24 + $0x68] sm:$0xff] %v253_v13  ;;  %v283_v28 = vld [vmem:[%s1453_s23 + $0x1c0] sm:$0xff]  ;;  %v285_v29 = vld [vmem:[%s1453_s23 + $0x1d0] sm:$0xff] }
  0x21   : > { %256 = vst [vmem:[%s1458_s24 + $0x70] sm:$0xff] %v255_v14  ;;  %v287_v30 = vld [vmem:[%s1453_s23 + $0x1e0] sm:$0xff]  ;;  %v289_v31 = vld [vmem:[%s1453_s23 + $0x1f0] sm:$0xff] }
  0x22   : > { %258 = vst [vmem:[%s1458_s24 + $0x78] sm:$0xff] %v257_v15  ;;  %v291_v32 = vld [vmem:[%s1453_s23 + $0x200] sm:$0xff]  ;;  %v293_v33 = vld [vmem:[%s1453_s23 + $0x210] sm:$0xff] }
  0x23   : > { %260 = vst [vmem:[%s1458_s24 + $0x80] sm:$0xff] %v259_v16  ;;  %v295_v34 = vld [vmem:[%s1453_s23 + $0x220] sm:$0xff]  ;;  %v297_v35 = vld [vmem:[%s1453_s23 + $0x230] sm:$0xff] }
  0x24   : > { %262 = vst [vmem:[%s1458_s24 + $0x88] sm:$0xff] %v261_v17  ;;  %v299_v36 = vld [vmem:[%s1453_s23 + $0x240] sm:$0xff]  ;;  %v301_v37 = vld [vmem:[%s1453_s23 + $0x250] sm:$0xff] }
  0x25   : > { %264 = vst [vmem:[%s1458_s24 + $0x90] sm:$0xff] %v263_v18  ;;  %v303_v38 = vld [vmem:[%s1453_s23 + $0x260] sm:$0xff]  ;;  %v305_v39 = vld [vmem:[%s1453_s23 + $0x270] sm:$0xff] }
  0x26   : > { %266 = vst [vmem:[%s1458_s24 + $0x98] sm:$0xff] %v265_v19  ;;  %v307_v40 = vld [vmem:[%s1453_s23 + $0x280] sm:$0xff]  ;;  %v309_v41 = vld [vmem:[%s1453_s23 + $0x290] sm:$0xff] }
  0x27   : > { %268 = vst [vmem:[%s1458_s24 + $0xa0] sm:$0xff] %v267_v20  ;;  %v311_v42 = vld [vmem:[%s1453_s23 + $0x2a0] sm:$0xff]  ;;  %v313_v43 = vld [vmem:[%s1453_s23 + $0x2b0] sm:$0xff] }
  0x28   : > { %270 = vst [vmem:[%s1458_s24 + $0xa8] sm:$0xff] %v269_v21 }
  0x29   : > { %272 = vst [vmem:[%s1458_s24 + $0xb0] sm:$0xff] %v271_v22 }
  0x2a   : > { %274 = vst [vmem:[%s1458_s24 + $0xb8] sm:$0xff] %v273_v23 }
  0x2b   : > { %276 = vst [vmem:[%s1458_s24 + $0xc0] sm:$0xff] %v275_v24 }
  0x2c   : > { %278 = vst [vmem:[%s1458_s24 + $0xc8] sm:$0xff] %v277_v25 }
  0x2d   : > { %280 = vst [vmem:[%s1458_s24 + $0xd0] sm:$0xff] %v279_v26 }
  0x2e   : > { %282 = vst [vmem:[%s1458_s24 + $0xd8] sm:$0xff] %v281_v27 }
  0x2f   : > { %284 = vst [vmem:[%s1458_s24 + $0xe0] sm:$0xff] %v283_v28 }
  0x30   : > { %286 = vst [vmem:[%s1458_s24 + $0xe8] sm:$0xff] %v285_v29 }
  0x31   : > { %288 = vst [vmem:[%s1458_s24 + $0xf0] sm:$0xff] %v287_v30 }
  0x32   : > { %290 = vst [vmem:[%s1458_s24 + $0xf8] sm:$0xff] %v289_v31 }
  0x33   : > { %292 = vst [vmem:[%s1458_s24 + $0x100] sm:$0xff] %v291_v32 }
  0x34   : > { %294 = vst [vmem:[%s1458_s24 + $0x108] sm:$0xff] %v293_v33 }
  0x35   : > { %296 = vst [vmem:[%s1458_s24 + $0x110] sm:$0xff] %v295_v34 }
  0x36   : > { %298 = vst [vmem:[%s1458_s24 + $0x118] sm:$0xff] %v297_v35 }
  0x37   : > { %300 = vst [vmem:[%s1458_s24 + $0x120] sm:$0xff] %v299_v36 }
  0x38   : > { %302 = vst [vmem:[%s1458_s24 + $0x128] sm:$0xff] %v301_v37 }
  0x39   : > { %304 = vst [vmem:[%s1458_s24 + $0x130] sm:$0xff] %v303_v38 }
  0x3a   : > { %306 = vst [vmem:[%s1458_s24 + $0x138] sm:$0xff] %v305_v39 }
  0x3b   : > { %308 = vst [vmem:[%s1458_s24 + $0x140] sm:$0xff] %v307_v40 }
  0x3c   : > { %310 = vst [vmem:[%s1458_s24 + $0x148] sm:$0xff] %v309_v41 }
  0x3d   : > { %312 = vst [vmem:[%s1458_s24 + $0x150] sm:$0xff] %v311_v42 }
  0x3e   : > { %314 = vst [vmem:[%s1458_s24 + $0x158] sm:$0xff] %v313_v43 }
  0x3f PF: > { %p1019_p7 = scmp.ge.s32.totalorder %s1396_s11, 1  ;;  %p319_p8 = scmp.lt.s32.totalorder %s1396_s11, 3 }
  0x41   : > { %p320_p9 = pnand %p1019_p7, %p319_p8 }
  0x42   : > { %s326_s25 = sand.u32 (!%p320_p9), 1, %s1388_s9  }
  0x43   : > { %323 = sbr.rel (%p320_p9) target bundleno = 334 (0x14e), region = 62 }
  0x44   : > { %s1324_s26 = smul.u32 (!%p320_p9), 352, %s326_s25 }
  0x45   : > { %s1325_s23 = smul.u32 (!%p320_p9), 96, %s326_s25 }
  0x46   : > { %s1550_s27 = scalar_lea.vmem (!%p320_p9), [#allocation2], %s1324_s26 }
  0x47   : > { %s1732_s9 = scalar_lea.vmem (!%p320_p9), [#allocation3], %s1325_s23 }
  0x48   : > { %v1114_v44 = vld [vmem:[%s1550_s27 + $0x70] sm:$0xf]  ;;  %v1279_v45 = vld [vmem:[%s1550_s27 + $0x74] sm:$0xf0]  ;;  %v1106_v49 = vld [vmem:[%s1550_s27 + $0x60] sm:$0xf] }
  0x49   : > { %v1226_v46 = vld [vmem:[%s1550_s27 + $0x150] sm:$0xf]  ;;  %v1115_v47 = vor.u32 %v1279_v45, %v1114_v44  ;;  %v1307_v48 = vld [vmem:[%s1550_s27 + $0x154] sm:$0xf0]  ;;  %v1277_v50 = vld [vmem:[%s1550_s27 + $0x64] sm:$0xf0] }
  0x4a   : > { %v1227_v51 = vor.u32 %v1307_v48, %v1226_v46  ;;  %v1218_v52 = vld [vmem:[%s1550_s27 + $0x140] sm:$0xf]  ;;  %v1305_v53 = vld [vmem:[%s1550_s27 + $0x144] sm:$0xf0]  ;;  %v1107_v54 = vor.u32 %v1277_v50, %v1106_v49  ;;  %v1098_v56 = vld [vmem:[%s1550_s27 + $0x50] sm:$0xf] }
  0x4b   : > { %680 = vmatpush.bf16.msra.mxu0 %v1115_v47  ;;  %1309 = vmatpush.bf16.msra.mxu1 %v1115_v47  ;;  %v1219_v55 = vor.u32 %v1305_v53, %v1218_v52  ;;  %v1275_v57 = vld [vmem:[%s1550_s27 + $0x54] sm:$0xf0]  ;;  %v1210_v58 = vld [vmem:[%s1550_s27 + $0x130] sm:$0xf]  ;;  %v1090_v62 = vld [vmem:[%s1550_s27 + $0x40] sm:$0xf] }
  0x4c   : > { %730 = vmatpush.bf16.msra.mxu2 %v1227_v51  ;;  %1317 = vmatpush.bf16.msra.mxu3 %v1227_v51  ;;  %v1303_v59 = vld [vmem:[%s1550_s27 + $0x134] sm:$0xf0]  ;;  %v1099_v60 = vor.u32 %v1275_v57, %v1098_v56  ;;  %v1273_v63 = vld [vmem:[%s1550_s27 + $0x44] sm:$0xf0]  ;;  %v1202_v0 = vld [vmem:[%s1550_s27 + $0x120] sm:$0xf] }
  0x4d   : > { %v1211_v61 = vor.u32 %v1303_v59, %v1210_v58  ;;  %v1301_v1 = vld [vmem:[%s1550_s27 + $0x124] sm:$0xf0]  ;;  %v1091_v2 = vor.u32 %v1273_v63, %v1090_v62  ;;  %v1082_v4 = vld [vmem:[%s1550_s27 + $0x30] sm:$0xf]  ;;  %v1271_v5 = vld [vmem:[%s1550_s27 + $0x34] sm:$0xf0] }
  0x4e   : > { %v1203_v3 = vor.u32 %v1301_v1, %v1202_v0  ;;  %v1194_v6 = vld [vmem:[%s1550_s27 + $0x110] sm:$0xf]  ;;  %v1299_v7 = vld [vmem:[%s1550_s27 + $0x114] sm:$0xf0]  ;;  %v1083_v8 = vor.u32 %v1271_v5, %v1082_v4  ;;  %v1074_v10 = vld [vmem:[%s1550_s27 + $0x20] sm:$0xf] }
  0x4f   : > { %681 = vmatpush.bf16.msra.mxu0 %v1107_v54  ;;  %1310 = vmatpush.bf16.msra.mxu1 %v1107_v54  ;;  %v1195_v9 = vor.u32 %v1299_v7, %v1194_v6  ;;  %v1269_v11 = vld [vmem:[%s1550_s27 + $0x24] sm:$0xf0]  ;;  %v1186_v12 = vld [vmem:[%s1550_s27 + $0x100] sm:$0xf]  ;;  %v1278_v14 = vld [vmem:[%s1550_s27 + $0x74] sm:$0xf] }
  0x50   : > { %731 = vmatpush.bf16.msra.mxu2 %v1219_v55  ;;  %1318 = vmatpush.bf16.msra.mxu3 %v1219_v55  ;;  %v1297_v13 = vld [vmem:[%s1550_s27 + $0x104] sm:$0xf0]  ;;  %v1116_v15 = vld [vmem:[%s1550_s27 + $0x78] sm:$0xf0]  ;;  %v1294_v16 = vld [vmem:[%s1550_s27 + $0xf4] sm:$0xf]  ;;  %v1075_v18 = vor.u32 %v1269_v11, %v1074_v10 }
  0x51   : > { %v1180_v17 = vld [vmem:[%s1550_s27 + $0xf8] sm:$0xf0]  ;;  %v1030_v19 = vld [vmem:[%s1781_s1 + $0x8] sm:$0xf]  ;;  %v1187_v20 = vor.u32 %v1297_v13, %v1186_v12  ;;  %v1257_v21 = vld [vmem:[%s1781_s1 + $0x10] sm:$0xf0]  ;;  %v1119_v24 = vor.u32 %v1278_v14, %v1116_v15 }
  0x52   : > { %v1066_v22 = vld [vmem:[%s1550_s27 + $0x10] sm:$0xf]  ;;  %v1267_v23 = vld [vmem:[%s1550_s27 + $0x14] sm:$0xf0]  ;;  %v1183_v25 = vor.u32 %v1294_v16, %v1180_v17  ;;  %v1276_v26 = vld [vmem:[%s1550_s27 + $0x64] sm:$0xf]  ;;  %v1598_v32 = vor.u32 %v1257_v21, %v1030_v19 }
  0x53   : > { %682 = vmatpush.bf16.msra.mxu0 %v1099_v60  ;;  %1311 = vmatpush.bf16.msra.mxu1 %v1099_v60  ;;  %v1054_v27 = vld [vmem:[%s1781_s1 + $0x38] sm:$0xf]  ;;  %v1263_v28 = vld [vmem:[%s1781_s1 + $0x40] sm:$0xf0]  ;;  %v1108_v29 = vld [vmem:[%s1550_s27 + $0x68] sm:$0xf0]  ;;  %v1067_v33 = vor.u32 %v1267_v23, %v1066_v22 }
  0x54   : > { %732 = vmatpush.bf16.msra.mxu2 %v1211_v61  ;;  %1319 = vmatpush.bf16.msra.mxu3 %v1211_v61  ;;  %v1292_v30 = vld [vmem:[%s1550_s27 + $0xe4] sm:$0xf]  ;;  %v1172_v31 = vld [vmem:[%s1550_s27 + $0xe8] sm:$0xf0]  ;;  %vm670_vm0 = vcmask 785408   ;;  %v1603_v37 = vor.u32 %v1263_v28, %v1054_v27  ;;  %v1111_v38 = vor.u32 %v1276_v26, %v1108_v29  ;;  %s1308_s25 = sshll.u32 (%p1443_p5), %s1013_s12, 4 }
  0x55   : > { %v1058_v34 = vld [vmem:[%s1550_s27] sm:$0xf]  ;;  %v1265_v35 = vld [vmem:[%s1550_s27 + $0x4] sm:$0xf0]  ;;  %v1178_v36 = vld [vmem:[%s1550_s27 + $0xf0] sm:$0xf]  ;;  %v1175_v39 = vor.u32 %v1292_v30, %v1172_v31  ;;  %s917_s17 = scalar_lea.vmem (%p1443_p5), %s1782_s2, %s1308_s25 }
  0x56   : > { %v1295_v40 = vld [vmem:[%s1550_s27 + $0xf4] sm:$0xf0]  ;;  %v1306_v41 = vld [vmem:[%s1550_s27 + $0x154] sm:$0xf]  ;;  %v1228_v42 = vld [vmem:[%s1550_s27 + $0x158] sm:$0xf0]  ;;  %v1059_v46 = vor.u32 %v1265_v35, %v1058_v34 }
  0x57   : > { %683 = vmatpush.bf16.msra.mxu0 %v1091_v2  ;;  %1312 = vmatpush.bf16.msra.mxu1 %v1091_v2  ;;  %v1274_v43 = vld [vmem:[%s1550_s27 + $0x54] sm:$0xf]  ;;  %v1100_v44 = vld [vmem:[%s1550_s27 + $0x58] sm:$0xf0]  ;;  %v1022_v45 = vld [vmem:[%s1781_s1] sm:$0xf]  ;;  %v1231_v50 = vor.u32 %v1306_v41, %v1228_v42  ;;  %v1179_v53 = vor.u32 %v1295_v40, %v1178_v36 }
  0x58   : > { %733 = vmatpush.bf16.msra.mxu2 %v1203_v3  ;;  %1320 = vmatpush.bf16.msra.mxu3 %v1203_v3  ;;  %v1256_v47 = vld [vmem:[%s1781_s1 + $0x8] sm:$0xf0]  ;;  %v1290_v48 = vld [vmem:[%s1550_s27 + $0xd4] sm:$0xf]  ;;  %v1164_v49 = vld [vmem:[%s1550_s27 + $0xd8] sm:$0xf0]  ;;  %v1103_v54 = vor.u32 %v1274_v43, %v1100_v44 }
  0x59   : > { %v1046_v51 = vld [vmem:[%s1781_s1 + $0x30] sm:$0xf]  ;;  %v1262_v52 = vld [vmem:[%s1781_s1 + $0x38] sm:$0xf0]  ;;  %v1170_v55 = vld [vmem:[%s1550_s27 + $0xe0] sm:$0xf]  ;;  %v1631_v58 = vor.u32 %v1256_v47, %v1022_v45  ;;  %v1167_v59 = vor.u32 %v1290_v48, %v1164_v49 }
  0x5a   : > { %v1304_v56 = vld [vmem:[%s1550_s27 + $0x144] sm:$0xf]  ;;  %v1220_v57 = vld [vmem:[%s1550_s27 + $0x148] sm:$0xf0]  ;;  %v1293_v60 = vld [vmem:[%s1550_s27 + $0xe4] sm:$0xf0]  ;;  %v1638_v1 = vor.u32 %v1262_v52, %v1046_v51 }
  0x5b   : > { %684 = vmatpush.bf16.msra.mxu0 %v1083_v8  ;;  %1313 = vmatpush.bf16.msra.mxu1 %v1083_v8  ;;  %v1272_v61 = vld [vmem:[%s1550_s27 + $0x44] sm:$0xf]  ;;  %v1092_v62 = vld [vmem:[%s1550_s27 + $0x48] sm:$0xf0]  ;;  %v1223_v2 = vor.u32 %v1304_v56, %v1220_v57  ;;  %v1171_v3 = vor.u32 %v1293_v60, %v1170_v55  ;;  %v1162_v5 = vld [vmem:[%s1550_s27 + $0xd0] sm:$0xf] }
  0x5c   : > { %734 = vmatpush.bf16.msra.mxu2 %v1195_v9  ;;  %1321 = vmatpush.bf16.msra.mxu3 %v1195_v9  ;;  %v1288_v63 = vld [vmem:[%s1550_s27 + $0xc4] sm:$0xf]  ;;  %v1156_v0 = vld [vmem:[%s1550_s27 + $0xc8] sm:$0xf0]  ;;  %v1095_v4 = vor.u32 %v1272_v61, %v1092_v62  ;;  %v1302_v6 = vld [vmem:[%s1550_s27 + $0x134] sm:$0xf] }
  0x5d   : > { %v1212_v7 = vld [vmem:[%s1550_s27 + $0x138] sm:$0xf0]  ;;  %v1159_v8 = vor.u32 %v1288_v63, %v1156_v0  ;;  %v1291_v9 = vld [vmem:[%s1550_s27 + $0xd4] sm:$0xf0]  ;;  %v1270_v10 = vld [vmem:[%s1550_s27 + $0x34] sm:$0xf] }
  0x5e   : > { %v1084_v11 = vld [vmem:[%s1550_s27 + $0x38] sm:$0xf0]  ;;  %v1286_v12 = vld [vmem:[%s1550_s27 + $0xb4] sm:$0xf]  ;;  %v1042_v14 = vld [vmem:[%s1781_s1 + $0x20] sm:$0xf]  ;;  %v1215_v16 = vor.u32 %v1302_v6, %v1212_v7  ;;  %v1163_v17 = vor.u32 %v1291_v9, %v1162_v5 }
  0x5f   : > { %685 = vmatpush.bf16.msra.mxu0 %v1075_v18  ;;  %1314 = vmatpush.bf16.msra.mxu1 %v1075_v18  ;;  %v1148_v13 = vld [vmem:[%s1550_s27 + $0xb8] sm:$0xf0]  ;;  %v1260_v15 = vld [vmem:[%s1781_s1 + $0x28] sm:$0xf0]  ;;  %v1087_v18 = vor.u32 %v1270_v10, %v1084_v11  ;;  %v1154_v19 = vld [vmem:[%s1550_s27 + $0xc0] sm:$0xf] }
  0x60   : > { %735 = vmatpush.bf16.msra.mxu2 %v1187_v20  ;;  %1322 = vmatpush.bf16.msra.mxu3 %v1187_v20  ;;  %v1300_v20 = vld [vmem:[%s1550_s27 + $0x124] sm:$0xf]  ;;  %v1204_v21 = vld [vmem:[%s1550_s27 + $0x128] sm:$0xf0]  ;;  %v1151_v22 = vor.u32 %v1286_v12, %v1148_v13  ;;  %v1289_v23 = vld [vmem:[%s1550_s27 + $0xc4] sm:$0xf0]  ;;  %v1662_v26 = vor.u32 %v1260_v15, %v1042_v14 }
  0x61   : > { %v1284_v27 = vld [vmem:[%s1550_s27 + $0xa4] sm:$0xf]  ;;  %v1140_v28 = vld [vmem:[%s1550_s27 + $0xa8] sm:$0xf0]  ;;  %v1146_v29 = vld [vmem:[%s1550_s27 + $0xb0] sm:$0xf]  ;;  %v1207_v30 = vor.u32 %v1300_v20, %v1204_v21  ;;  %v1155_v31 = vor.u32 %v1289_v23, %v1154_v19 }
  0x62   : > { %v1287_v34 = vld [vmem:[%s1550_s27 + $0xb4] sm:$0xf0]  ;;  %v1298_v35 = vld [vmem:[%s1550_s27 + $0x114] sm:$0xf]  ;;  %v1196_v36 = vld [vmem:[%s1550_s27 + $0x118] sm:$0xf0] }
  0x63   : > { %1232 = vmatmul.msk.bf16.vlgmr.msra.gmra.mxu2 %vm670_vm0, %v1598_v32  ;;  %686 = vmatpush.bf16.msra.mxu0 %v1067_v33  ;;  %v1068_v40 = vld [vmem:[%s1550_s27 + $0x18] sm:$0xf0]  ;;  %v1034_v41 = vld [vmem:[%s1781_s1 + $0x18] sm:$0xf]  ;;  %v1259_v42 = vld [vmem:[%s1781_s1 + $0x20] sm:$0xf0]  ;;  %v1199_v45 = vor.u32 %v1298_v35, %v1196_v36 }
  0x64   : > { %752 = vmatpush.bf16.msrb.mxu3 %v1119_v24  ;;  %776 = vmatpush.bf16.msrb.mxu2 %v1183_v25  ;;  %v1268_v24 = vld [vmem:[%s1550_s27 + $0x24] sm:$0xf]  ;;  %v1076_v25 = vld [vmem:[%s1550_s27 + $0x28] sm:$0xf0]  ;;  %v1282_v43 = vld [vmem:[%s1550_s27 + $0x94] sm:$0xf]  ;;  %v1035_v51 = vor.u32 %v1259_v42, %v1034_v41 }
  0x65   : > { %1315 = vmatpush.bf16.msra.mxu1 %v1067_v33  ;;  %1234 = vmatmul.msk.bf16.vlgmr.msra.gmra.mxu3 %vm670_vm0, %v1603_v37  ;;  %v1079_v33 = vor.u32 %v1268_v24, %v1076_v25  ;;  %v1132_v44 = vld [vmem:[%s1550_s27 + $0x98] sm:$0xf0]  ;;  %v1138_v48 = vld [vmem:[%s1550_s27 + $0xa0] sm:$0xf]  ;;  %v1296_v49 = vld [vmem:[%s1550_s27 + $0x104] sm:$0xf] }
  0x66   : > { %v1135_v52 = vor.u32 %v1282_v43, %v1132_v44  ;;  %v1060_v55 = vld [vmem:[%s1550_s27 + $0x8] sm:$0xf0]  ;;  %v1280_v56 = vld [vmem:[%s1550_s27 + $0x84] sm:$0xf]  ;;  %v1130_v63 = vld [vmem:[%s1550_s27 + $0x90] sm:$0xf] }
  0x67   : > { %687 = vmatpush.bf16.msra.mxu0 %v1059_v46  ;;  %v1124_v57 = vld [vmem:[%s1550_s27 + $0x88] sm:$0xf0]  ;;  %v1283_v0 = vld [vmem:[%s1550_s27 + $0x94] sm:$0xf0]  ;;  %v1122_v5 = vld [vmem:[%s1550_s27 + $0x80] sm:$0xf] }
  0x68   : > { %753 = vmatpush.bf16.msrb.mxu3 %v1111_v38  ;;  %777 = vmatpush.bf16.msrb.mxu2 %v1175_v39  ;;  %v1143_v38 = vor.u32 %v1284_v27, %v1140_v28  ;;  %v1266_v39 = vld [vmem:[%s1550_s27 + $0x14] sm:$0xf]  ;;  %v1127_v62 = vor.u32 %v1280_v56, %v1124_v57  ;;  %v1281_v6 = vld [vmem:[%s1550_s27 + $0x84] sm:$0xf0]  ;;  %v1258_v9 = vld [vmem:[%s1781_s1 + $0x1c] sm:$0xf] }
  0x69   : > { %1316 = vmatpush.bf16.msra.mxu1 %v1059_v46  ;;  %v1147_v46 = vor.u32 %v1287_v34, %v1146_v29  ;;  %v1071_v47 = vor.u32 %v1266_v39, %v1068_v40  ;;  %v1036_v10 = vld [vmem:[%s1781_s1 + $0x24] sm:$0xf0] }
  0x6a   : > { %688 = vmatmul.bf16.vlgmr.msra.gmra.mxu0 %v1631_v58  ;;  %v1039_v11 = vor.u32 %v1258_v9, %v1036_v10 }
  0x6b   : > { %802 = vmatpush.bf16.msrb.mxu0 %v1231_v50  ;;  %v1188_v50 = vld [vmem:[%s1550_s27 + $0x108] sm:$0xf0] }
  0x6c   : > { %754 = vmatpush.bf16.msrb.mxu3 %v1103_v54  ;;  %778 = vmatpush.bf16.msrb.mxu2 %v1167_v59  ;;  %v1264_v54 = vld [vmem:[%s1550_s27 + $0x4] sm:$0xf]  ;;  %v1191_v59 = vor.u32 %v1296_v49, %v1188_v50 }
  0x6d   : > { %704 = vmatpush.bf16.msrb.mxu1 %v1179_v53  ;;  %v1285_v53 = vld [vmem:[%s1550_s27 + $0xa4] sm:$0xf0]  ;;  %v1063_v61 = vor.u32 %v1264_v54, %v1060_v55 }
  0x6e   : > { %698 = vmatmul.bf16.vlgmr.msra.gmra.mxu1 %v1638_v1  ;;  %v1139_v60 = vor.u32 %v1285_v53, %v1138_v48 }
  0x6f   : > { %803 = vmatpush.bf16.msrb.mxu0 %v1223_v2  ;;  %v1255_v2 = vld [vmem:[%s1781_s1 + $0x4] sm:$0xf] }
  0x70   : > { %755 = vmatpush.bf16.msrb.mxu3 %v1095_v4  ;;  %779 = vmatpush.bf16.msrb.mxu2 %v1159_v8  ;;  %v1131_v4 = vor.u32 %v1283_v0, %v1130_v63  ;;  %v1123_v8 = vor.u32 %v1281_v6, %v1122_v5 }
  0x71   : > { %705 = vmatpush.bf16.msrb.mxu1 %v1171_v3  ;;  %v1024_v3 = vld [vmem:[%s1781_s1 + $0xc] sm:$0xf0] }
  0x72   : > { %v1027_v7 = vor.u32 %v1255_v2, %v1024_v3 }
  0x73   : > { %804 = vmatpush.bf16.msrb.mxu0 %v1215_v16  ;;  %1233 = vmatmul.msk.bf16.gmra.mxu2 %vm670_vm0, %v1662_v26 }
  0x74   : > { %756 = vmatpush.bf16.msrb.mxu3 %v1087_v18  ;;  %780 = vmatpush.bf16.msrb.mxu2 %v1151_v22 }
  0x75   : > { %706 = vmatpush.bf16.msrb.mxu1 %v1163_v17 }
  0x77   : > { %805 = vmatpush.bf16.msrb.mxu0 %v1207_v30 }
  0x78   : > { %757 = vmatpush.bf16.msrb.mxu3 %v1079_v33  ;;  %781 = vmatpush.bf16.msrb.mxu2 %v1143_v38 }
  0x79   : > { %707 = vmatpush.bf16.msrb.mxu1 %v1155_v31 }
  0x7a   : > { %693 = vmatmul.bf16.gmra.mxu0 %v1035_v51 }
  0x7b   : > { %806 = vmatpush.bf16.msrb.mxu0 %v1199_v45 }
  0x7c   : > { %758 = vmatpush.bf16.msrb.mxu3 %v1071_v47  ;;  %782 = vmatpush.bf16.msrb.mxu2 %v1135_v52 }
  0x7d   : > { %708 = vmatpush.bf16.msrb.mxu1 %v1147_v46 }
  0x7f   : > { %807 = vmatpush.bf16.msrb.mxu0 %v1191_v59 }
  0x80   : > { %759 = vmatpush.bf16.msrb.mxu3 %v1063_v61  ;;  %783 = vmatpush.bf16.msrb.mxu2 %v1127_v62 }
  0x81   : > { %709 = vmatpush.bf16.msrb.mxu1 %v1139_v60 }
  0x83   : > { %760 = vmatmul.bf16.vlgmr.msrb.gmra.mxu3 %v1631_v58  ;;  %784 = vmatmul.bf16.vlgmr.msrb.gmra.mxu2 %v1027_v7  ;;  %v1261_v58 = vld [vmem:[%s1781_s1 + $0x34] sm:$0xf] }
  0x85   : > { %710 = vmatpush.bf16.msrb.mxu1 %v1131_v4 }
  0x89   : > { %711 = vmatpush.bf16.msrb.mxu1 %v1123_v8 }
  0x8a   : > { %1235 = vmatmul.msk.bf16.vlgmr.msrb.gmra.mxu0 %vm670_vm0, %v1598_v32  ;;  %v1048_v32 = vld [vmem:[%s1781_s1 + $0x3c] sm:$0xf0] }
  0x8b   : > { %v1051_v12 = vor.u32 %v1261_v58, %v1048_v32 }
  0x8c   : > { %712 = vmatmul.bf16.vlgmr.msrb.gmra.mxu1 %v1027_v7 }
  0x93   : > { %765 = vmatmul.bf16.gmra.mxu3 %v1035_v51  ;;  %789 = vmatmul.bf16.gmra.mxu2 %v1039_v11 }
  0x9a   : > { %1236 = vmatmul.msk.bf16.gmra.mxu0 %vm670_vm0, %v1662_v26 }
  0x9c   : > { %717 = vmatmul.bf16.gmra.mxu1 %v1039_v11 }
  0xa3   : > { %770 = vmatmul.bf16.gmra.mxu3 %v1638_v1  ;;  %794 = vmatmul.bf16.gmra.mxu2 %v1051_v12 }
  0xaa   : > { %1237 = vmatmul.msk.bf16.gmra.mxu0 %vm670_vm0, %v1603_v37 }
  0xac   : > { %722 = vmatmul.bf16.gmra.mxu1 %v1051_v12 }
  0xe6   : > { %v737_v13 = vpop.f32.mrf.mxu2 }
  0xe7   : > { %v689_v14 = vpop.f32.mrf.mxu0 }
  0xe8   : > { %v1720_v17 = vpop.f32.mrf.mxu3 }
  0xeb   : > { %v1722_v18 = vpop.f32.mrf.mxu1 }
  0xee   : > { %v739_v15 = vpop.f32.mrf.mxu2 }
  0xef   : > { %v691_v16 = vpop.f32.mrf.mxu0 }
  0xf0   : > { %v1724_v21 = vpop.f32.mrf.mxu3 }
  0xf3   : > { %v1726_v22 = vpop.f32.mrf.mxu1 }
  0xf6   : > { %v742_v19 = vpop.f32.mrf.mxu2 }
  0xf7   : > { %v694_v20 = vpop.f32.mrf.mxu0 }
  0xfe   : > { %v1728_v1 = vpop.f32.mrf.mxu2 }
  0xff   : > { %v696_v23 = vpop.f32.mrf.mxu0 }
 0x106   : > { %v761_v24 = vpop.f32.mrf.mxu3  ;;  %v785_v26 = vpop.f32.mrf.mxu2 }
 0x107   : > { %v786_v27 = vadd.f32 %v785_v26, %v761_v24  ;;  %v809_v28 = vpop.f32.mrf.mxu0 }
 0x109   : > { %v713_v25 = vpop.f32.mrf.mxu1  ;;  %v810_v30 = vadd.f32 %v809_v28, %v786_v27 }
 0x10a   : > { %v714_v37 = vadd.f32 %v713_v25, %v689_v14 }
 0x10b   : > { %v837_v33 = vmin.f32 %v810_v30, 0.0  ;;  %vm825_vm2 = vcmp.gt.f32.partialorder %v810_v30, 0.0 }
 0x10c   : > { %v738_v29 = vadd.f32 %v737_v13, %v714_v37 }
 0x10d   : > { %v850_v36 = vmul.f32 1.442695, %v837_v33 }
 0x10e   : > { %v836_v31 = vmin.f32 %v738_v29, 0.0  ;;  %v763_v34 = vpop.f32.mrf.mxu3  ;;  %v787_v40 = vpop.f32.mrf.mxu2  ;;  %vm824_vm1 = vcmp.gt.f32.partialorder %v738_v29, 0.0 }
 0x10f   : > { %v788_v41 = vadd.f32 %v787_v40, %v763_v34  ;;  %v811_v42 = vpop.f32.mrf.mxu0 }
 0x110   : > { %v848_v35 = vmul.f32 1.442695, %v836_v31 }
 0x111   : > { %v715_v38 = vpop.f32.mrf.mxu1  ;;  %v812_v44 = vadd.f32 %v811_v42, %v788_v41 }
 0x112   : > { %1350 = vpow2.f32 %v848_v35  ;;  %v716_v39 = vadd.f32 %v715_v38, %v691_v16 }
 0x113   : > { %1352 = vpow2.f32 %v850_v36  ;;  %v839_v46 = vmin.f32 %v812_v44, 0.0  ;;  %vm827_vm4 = vcmp.gt.f32.partialorder %v812_v44, 0.0 }
 0x114   : > { %v740_v43 = vadd.f32 %v739_v15, %v716_v39 }
 0x115   : > { %v854_v52 = vmul.f32 1.442695, %v839_v46 }
 0x116   : > { %v838_v45 = vmin.f32 %v740_v43, 0.0  ;;  %v766_v47 = vpop.f32.mrf.mxu3  ;;  %v790_v56 = vpop.f32.mrf.mxu2  ;;  %vm826_vm3 = vcmp.gt.f32.partialorder %v740_v43, 0.0 }
 0x117   : > { %v791_v59 = vadd.f32 %v790_v56, %v766_v47  ;;  %v814_v60 = vpop.f32.mrf.mxu0 }
 0x118   : > { %v1351_v48 = vpop.eup %1350  ;;  %v852_v49 = vmul.f32 1.442695, %v838_v45 }
 0x119   : > { %v1353_v50 = vpop.eup %1352  ;;  %v1238_v51 = vadd.f32 -1.0, %v1351_v48  ;;  %v718_v53 = vpop.f32.mrf.mxu1  ;;  %v815_v63 = vadd.f32 %v814_v60, %v791_v59 }
 0x11a   : > { %v1239_v54 = vadd.f32 -1.0, %v1353_v50  ;;  %1354 = vpow2.f32 %v852_v49  ;;  %v719_v55 = vadd.f32 %v718_v53, %v694_v20 }
 0x11b   : > { %v884_v57 = vsel %vm824_vm1, %v738_v29, %v1238_v51  ;;  %1356 = vpow2.f32 %v854_v52  ;;  %v841_v2 = vmin.f32 %v815_v63, 0.0  ;;  %vm829_vm6 = vcmp.gt.f32.partialorder %v815_v63, 0.0 }
 0x11c   : > { %896 = vst [vmem:[%s1732_s9] sm:$0xff] %v884_v57  ;;  %v885_v61 = vsel %vm825_vm2, %v810_v30, %v1239_v54  ;;  %v743_v62 = vadd.f32 %v742_v19, %v719_v55 }
 0x11d   : > { %897 = vst [vmem:[%s1732_s9 + $0x8] sm:$0xff] %v885_v61  ;;  %v858_v8 = vmul.f32 1.442695, %v841_v2 }
 0x11e   : > { %v840_v0 = vmin.f32 %v743_v62, 0.0  ;;  %v768_v3 = vpop.f32.mrf.mxu3  ;;  %v792_v58 = vpop.f32.mrf.mxu2  ;;  %vm828_vm5 = vcmp.gt.f32.partialorder %v743_v62, 0.0 }
 0x11f   : > { %v793_v12 = vadd.f32 %v792_v58, %v768_v3  ;;  %v816_v13 = vpop.f32.mrf.mxu0 }
 0x120   : > { %v1355_v4 = vpop.eup %1354  ;;  %v856_v5 = vmul.f32 1.442695, %v840_v0 }
 0x121   : > { %v1357_v6 = vpop.eup %1356  ;;  %v1240_v7 = vadd.f32 -1.0, %v1355_v4  ;;  %v720_v9 = vpop.f32.mrf.mxu1  ;;  %v817_v16 = vadd.f32 %v816_v13, %v793_v12 }
 0x122   : > { %v1241_v10 = vadd.f32 -1.0, %v1357_v6  ;;  %1358 = vpow2.f32 %v856_v5  ;;  %v721_v11 = vadd.f32 %v720_v9, %v696_v23 }
 0x123   : > { %v886_v32 = vsel %vm826_vm3, %v740_v43, %v1240_v7  ;;  %1360 = vpow2.f32 %v858_v8  ;;  %v843_v20 = vmin.f32 %v817_v16, 0.0  ;;  %vm831_vm8 = vcmp.gt.f32.partialorder %v817_v16, 0.0  ;;  %v930_v7 = vld [vmem:[%s1732_s9] sm:$0xff] (%p1443_p5) }
 0x124   : > { %898 = vst [vmem:[%s1732_s9 + $0x10] sm:$0xff] %v886_v32  ;;  %v887_v14 = vsel %vm827_vm4, %v812_v44, %v1241_v10  ;;  %v745_v15 = vadd.f32 %v1728_v1, %v721_v11  ;;  %v932_v8 = vld [vmem:[%s1732_s9 + $0x8] sm:$0xff] (%p1443_p5) }
 0x125   : > { %899 = vst [vmem:[%s1732_s9 + $0x18] sm:$0xff] %v887_v14  ;;  %v862_v27 = vmul.f32 1.442695, %v843_v20 }
 0x126   : > { %v842_v19 = vmin.f32 %v745_v15, 0.0  ;;  %v771_v37 = vpop.f32.mrf.mxu3  ;;  %v795_v31 = vpop.f32.mrf.mxu2  ;;  %vm830_vm7 = vcmp.gt.f32.partialorder %v745_v15, 0.0  ;;  %931 = vst [vmem:[%s917_s17] sm:$0xff] (%p1443_p5), %v930_v7 }
 0x127   : > { %v796_v33 = vadd.f32 %v795_v31, %v771_v37  ;;  %v819_v34 = vpop.f32.mrf.mxu0  ;;  %933 = vst [vmem:[%s917_s17 + $0x8] sm:$0xff] (%p1443_p5), %v932_v8 }
 0x128   : > { %v1359_v24 = vpop.eup %1358  ;;  %v860_v25 = vmul.f32 1.442695, %v842_v19 }
 0x129   : > { %v1361_v26 = vpop.eup %1360  ;;  %v1242_v23 = vadd.f32 -1.0, %v1359_v24  ;;  %v723_v28 = vpop.f32.mrf.mxu1  ;;  %v820_v38 = vadd.f32 %v819_v34, %v796_v33 }
 0x12a   : > { %v1243_v29 = vadd.f32 -1.0, %v1361_v26  ;;  %1362 = vpow2.f32 %v860_v25  ;;  %v724_v30 = vadd.f32 %v723_v28, %v1722_v18 }
 0x12b   : > { %v888_v1 = vsel %vm828_vm5, %v743_v62, %v1242_v23  ;;  %1364 = vpow2.f32 %v862_v27  ;;  %v845_v40 = vmin.f32 %v820_v38, 0.0  ;;  %vm833_vm10 = vcmp.gt.f32.partialorder %v820_v38, 0.0  ;;  %v934_v9 = vld [vmem:[%s1732_s9 + $0x10] sm:$0xff] (%p1443_p5) }
 0x12c   : > { %900 = vst [vmem:[%s1732_s9 + $0x20] sm:$0xff] %v888_v1  ;;  %v889_v35 = vsel %vm829_vm6, %v815_v63, %v1243_v29  ;;  %v748_v36 = vadd.f32 %v1720_v17, %v724_v30  ;;  %v936_v10 = vld [vmem:[%s1732_s9 + $0x18] sm:$0xff] (%p1443_p5) }
 0x12d   : > { %901 = vst [vmem:[%s1732_s9 + $0x28] sm:$0xff] %v889_v35  ;;  %v866_v18 = vmul.f32 1.442695, %v845_v40 }
 0x12e   : > { %v844_v39 = vmin.f32 %v748_v36, 0.0  ;;  %v773_v47 = vpop.f32.mrf.mxu3  ;;  %v797_v49 = vpop.f32.mrf.mxu2  ;;  %vm832_vm9 = vcmp.gt.f32.partialorder %v748_v36, 0.0  ;;  %935 = vst [vmem:[%s917_s17 + $0x20] sm:$0xff] (%p1443_p5), %v934_v9 }
 0x12f   : > { %v798_v50 = vadd.f32 %v797_v49, %v773_v47  ;;  %v821_v51 = vpop.f32.mrf.mxu0  ;;  %937 = vst [vmem:[%s917_s17 + $0x28] sm:$0xff] (%p1443_p5), %v936_v10 }
 0x130   : > { %v1363_v41 = vpop.eup %1362  ;;  %v864_v42 = vmul.f32 1.442695, %v844_v39 }
 0x131   : > { %v1365_v43 = vpop.eup %1364  ;;  %v1244_v44 = vadd.f32 -1.0, %v1363_v41  ;;  %v725_v45 = vpop.f32.mrf.mxu1  ;;  %v822_v54 = vadd.f32 %v821_v51, %v798_v50 }
 0x132   : > { %v1245_v46 = vadd.f32 -1.0, %v1365_v43  ;;  %1366 = vpow2.f32 %v864_v42  ;;  %v726_v48 = vadd.f32 %v725_v45, %v1726_v22 }
 0x133   : > { %v890_v17 = vsel %vm830_vm7, %v745_v15, %v1244_v44  ;;  %1368 = vpow2.f32 %v866_v18  ;;  %v847_v56 = vmin.f32 %v822_v54, 0.0  ;;  %vm835_vm12 = vcmp.gt.f32.partialorder %v822_v54, 0.0  ;;  %v938_v11 = vld [vmem:[%s1732_s9 + $0x20] sm:$0xff] (%p1443_p5) }
 0x134   : > { %902 = vst [vmem:[%s1732_s9 + $0x30] sm:$0xff] %v890_v17  ;;  %v891_v52 = vsel %vm831_vm8, %v817_v16, %v1245_v46  ;;  %v750_v53 = vadd.f32 %v1724_v21, %v726_v48  ;;  %v940_v58 = vld [vmem:[%s1732_s9 + $0x28] sm:$0xff] (%p1443_p5) }
 0x135   : > { %903 = vst [vmem:[%s1732_s9 + $0x38] sm:$0xff] %v891_v52  ;;  %v870_v61 = vmul.f32 1.442695, %v847_v56 }
 0x136   : > { %v846_v55 = vmin.f32 %v750_v53, 0.0  ;;  %vm834_vm11 = vcmp.gt.f32.partialorder %v750_v53, 0.0  ;;  %939 = vst [vmem:[%s917_s17 + $0x40] sm:$0xff] (%p1443_p5), %v938_v11 }
 0x137   : > { %941 = vst [vmem:[%s917_s17 + $0x48] sm:$0xff] (%p1443_p5), %v940_v58 }
 0x138   : > { %v1367_v57 = vpop.eup %1366  ;;  %v868_v59 = vmul.f32 1.442695, %v846_v55 }
 0x139   : > { %v1369_v60 = vpop.eup %1368  ;;  %v1246_v22 = vadd.f32 -1.0, %v1367_v57 }
 0x13a   : > { %v1247_v62 = vadd.f32 -1.0, %v1369_v60  ;;  %1370 = vpow2.f32 %v868_v59 }
 0x13b   : > { %v892_v63 = vsel %vm832_vm9, %v748_v36, %v1246_v22  ;;  %1372 = vpow2.f32 %v870_v61  ;;  %v942_v32 = vld [vmem:[%s1732_s9 + $0x30] sm:$0xff] (%p1443_p5) }
 0x13c   : > { %904 = vst [vmem:[%s1732_s9 + $0x40] sm:$0xff] %v892_v63  ;;  %v893_v21 = vsel %vm833_vm10, %v820_v38, %v1247_v62  ;;  %v944_v12 = vld [vmem:[%s1732_s9 + $0x38] sm:$0xff] (%p1443_p5) }
 0x13d   : > { %905 = vst [vmem:[%s1732_s9 + $0x48] sm:$0xff] %v893_v21 }
 0x13e   : > { %943 = vst [vmem:[%s917_s17 + $0x60] sm:$0xff] (%p1443_p5), %v942_v32 }
 0x13f   : > { %945 = vst [vmem:[%s917_s17 + $0x68] sm:$0xff] (%p1443_p5), %v944_v12 }
 0x140   : > { %v1371_v0 = vpop.eup %1370 }
 0x141   : > { %v1373_v2 = vpop.eup %1372  ;;  %v1248_v3 = vadd.f32 -1.0, %v1371_v0  ;;  %914 = sbr.rel (!%p1443_p5) target bundleno = 334 (0x14e), region = 70 }
 0x142   : > { %v1249_v4 = vadd.f32 -1.0, %v1373_v2 }
 0x143   : > { %v894_v5 = vsel %vm834_vm11, %v750_v53, %v1248_v3  ;;  %v946_v13 = vld [vmem:[%s1732_s9 + $0x40] sm:$0xff] (%p1443_p5) }
 0x144   : > { %906 = vst [vmem:[%s1732_s9 + $0x50] sm:$0xff] %v894_v5  ;;  %v895_v6 = vsel %vm835_vm12, %v822_v54, %v1249_v4  ;;  %v948_v14 = vld [vmem:[%s1732_s9 + $0x48] sm:$0xff] (%p1443_p5) }
 0x145   : > { %907 = vst [vmem:[%s1732_s9 + $0x58] sm:$0xff] %v895_v6 }
 0x146   : > { %947 = vst [vmem:[%s917_s17 + $0x80] sm:$0xff] %v946_v13 }
 0x147   : > { %949 = vst [vmem:[%s917_s17 + $0x88] sm:$0xff] %v948_v14 }
 0x14b   : > { %v950_v15 = vld [vmem:[%s1732_s9 + $0x50] sm:$0xff] }
 0x14c   : > { %v952_v16 = vld [vmem:[%s1732_s9 + $0x58] sm:$0xff]  ;;  %951 = vst [vmem:[%s917_s17 + $0xa0] sm:$0xff] %v950_v15 }
 0x14d   : > { %953 = vst [vmem:[%s917_s17 + $0xa8] sm:$0xff] %v952_v16 }
 0x14e PF: > { %p9_p10 = scmp.ge.s32.totalorder %s1430_s13, 4   ;;  %s1784_s9 = smov %s1392_s10 }
 0x14f   : > { %s1785_s10 = smov %s1441_s16  ;;  %s1786_s11 = smov %s1430_s13 }
 0x150   :  { %11 = sbr.rel (!%p9_p10) target bundleno = 2 (0x2), region = 124 }

// kernel: dbpnet_forward.10
= control target key start
LH: loop header
LB: loop body
LE: loop exit
PB: predicated region body
PF: predicated region fallthrough
CT: control target
= control target key end

     0   :  { %s1395_s9 = smov 0   ;;  %s1397_s10 = smov 0   ;;  %s1765_s0 = inlined_call_operand.vmem [shape: bf16[433,512], index: 0, kind: input, shape index: {}]   ;;  %s1766_s1 = inlined_call_operand.vmem [shape: bf16[24,433], index: 1, kind: input, shape index: {}]   ;;  %s1767_s2 = inlined_call_operand.vmem [shape: f32[24,512], index: 2, kind: output, shape index: {}]  }
   0x1   :  { %s1399_s11 = smov 0  }
   0x2 LB: > { %s1020_s12 = sadd.s32 4294967295, %s1377_s11   ;;  %s1412_s13 = sadd.s32 1, %s1377_s11   ;;  %s1377_s11 = sphi %s1399_s11, %s1771_s11   ;;  %s1373_s10 = sphi %s1397_s10, %s1770_s10   ;;  %s1369_s9 = sphi %s1395_s9, %s1769_s9  }
   0x3   : > { %s16_s14 = ssub.s32 %s1377_s11, %s1412_s13  ;;  %s19_s15 = sadd.s32 1, %s1373_s10 }
   0x4   : > { %p17_p0 = scmp.eq.s32.totalorder %s16_s14, 0  ;;  %p26_p1 = scmp.ne.s32.totalorder %s1373_s10, %s1369_s9 }
   0x5   : > { %p27_p2 = scmp.eq.s32.totalorder %s1377_s11, 0  ;;  %p77_p3 = scmp.eq.s32.totalorder %s1020_s12, 1 }
   0x6   : > { %s1423_s16 = scalar_select %p17_p0, %s1373_s10, %s19_s15  }
   0x7   : > { %p28_p4 = por %p27_p2, %p26_p1  ;;  %p1425_p5 = por %p77_p3, %p26_p1 }
   0x8   : > { %p1023_p6 = scmp.ge.s32.totalorder %s1377_s11, 2 }
   0xa   : > { %102 = sbr.rel (%p1023_p6) target bundleno = 74 (0x4a), region = 20 }
   0xf   : > { %105 = sbr.rel (!%p28_p4) target bundleno = 74 (0x4a), region = 24  ;;  %s107_s18 = sand.u32 (%p28_p4), 1, %s1373_s10  }
  0x10   : > { %s1267_s19 = sshll.u32 (%p28_p4), %s1377_s11, 3  ;;  %s1327_s20 = smul.u32 (%p28_p4), 440, %s107_s18 }
  0x11   : > { %s1435_s23 = scalar_lea.vmem (%p28_p4), %s1765_s0, %s1267_s19 }
  0x12   : > { %v249_v0 = vld [vmem:[%s1435_s23] sm:$0xff] (%p28_p4)  ;;  %v251_v1 = vld [vmem:[%s1435_s23 + $0x10] sm:$0xff] (%p28_p4)  ;;  %s1440_s24 = scalar_lea.vmem (%p28_p4), [#allocation2], %s1327_s20 }
  0x13   : > { %v253_v2 = vld [vmem:[%s1435_s23 + $0x20] sm:$0xff] (%p28_p4)  ;;  %250 = vst [vmem:[%s1440_s24] sm:$0xff] (%p28_p4), %v249_v0  ;;  %v255_v3 = vld [vmem:[%s1435_s23 + $0x30] sm:$0xff] (%p28_p4) }
  0x14   : > { %252 = vst [vmem:[%s1440_s24 + $0x8] sm:$0xff] %v251_v1  ;;  %v257_v4 = vld [vmem:[%s1435_s23 + $0x40] sm:$0xff]  ;;  %v259_v5 = vld [vmem:[%s1435_s23 + $0x50] sm:$0xff] }
  0x15   : > { %254 = vst [vmem:[%s1440_s24 + $0x10] sm:$0xff] %v253_v2  ;;  %v261_v6 = vld [vmem:[%s1435_s23 + $0x60] sm:$0xff]  ;;  %v263_v7 = vld [vmem:[%s1435_s23 + $0x70] sm:$0xff] }
  0x16   : > { %256 = vst [vmem:[%s1440_s24 + $0x18] sm:$0xff] %v255_v3  ;;  %v265_v8 = vld [vmem:[%s1435_s23 + $0x80] sm:$0xff]  ;;  %v267_v9 = vld [vmem:[%s1435_s23 + $0x90] sm:$0xff] }
  0x17   : > { %258 = vst [vmem:[%s1440_s24 + $0x20] sm:$0xff] %v257_v4  ;;  %v269_v10 = vld [vmem:[%s1435_s23 + $0xa0] sm:$0xff]  ;;  %v271_v11 = vld [vmem:[%s1435_s23 + $0xb0] sm:$0xff] }
  0x18   : > { %260 = vst [vmem:[%s1440_s24 + $0x28] sm:$0xff] %v259_v5  ;;  %v273_v12 = vld [vmem:[%s1435_s23 + $0xc0] sm:$0xff]  ;;  %v275_v13 = vld [vmem:[%s1435_s23 + $0xd0] sm:$0xff] }
  0x19   : > { %262 = vst [vmem:[%s1440_s24 + $0x30] sm:$0xff] %v261_v6  ;;  %v277_v14 = vld [vmem:[%s1435_s23 + $0xe0] sm:$0xff]  ;;  %v279_v15 = vld [vmem:[%s1435_s23 + $0xf0] sm:$0xff] }
  0x1a   : > { %264 = vst [vmem:[%s1440_s24 + $0x38] sm:$0xff] %v263_v7  ;;  %v281_v16 = vld [vmem:[%s1435_s23 + $0x100] sm:$0xff]  ;;  %v283_v17 = vld [vmem:[%s1435_s23 + $0x110] sm:$0xff] }
  0x1b   : > { %266 = vst [vmem:[%s1440_s24 + $0x40] sm:$0xff] %v265_v8  ;;  %v285_v18 = vld [vmem:[%s1435_s23 + $0x120] sm:$0xff]  ;;  %v287_v19 = vld [vmem:[%s1435_s23 + $0x130] sm:$0xff] }
  0x1c   : > { %268 = vst [vmem:[%s1440_s24 + $0x48] sm:$0xff] %v267_v9  ;;  %v289_v20 = vld [vmem:[%s1435_s23 + $0x140] sm:$0xff]  ;;  %v291_v21 = vld [vmem:[%s1435_s23 + $0x150] sm:$0xff] }
  0x1d   : > { %270 = vst [vmem:[%s1440_s24 + $0x50] sm:$0xff] %v269_v10  ;;  %v293_v22 = vld [vmem:[%s1435_s23 + $0x160] sm:$0xff]  ;;  %v295_v23 = vld [vmem:[%s1435_s23 + $0x170] sm:$0xff] }
  0x1e   : > { %272 = vst [vmem:[%s1440_s24 + $0x58] sm:$0xff] %v271_v11  ;;  %v297_v24 = vld [vmem:[%s1435_s23 + $0x180] sm:$0xff]  ;;  %v299_v25 = vld [vmem:[%s1435_s23 + $0x190] sm:$0xff] }
  0x1f   : > { %274 = vst [vmem:[%s1440_s24 + $0x60] sm:$0xff] %v273_v12  ;;  %v301_v26 = vld [vmem:[%s1435_s23 + $0x1a0] sm:$0xff]  ;;  %v303_v27 = vld [vmem:[%s1435_s23 + $0x1b0] sm:$0xff] }
  0x20   : > { %276 = vst [vmem:[%s1440_s24 + $0x68] sm:$0xff] %v275_v13  ;;  %v305_v28 = vld [vmem:[%s1435_s23 + $0x1c0] sm:$0xff]  ;;  %v307_v29 = vld [vmem:[%s1435_s23 + $0x1d0] sm:$0xff] }
  0x21   : > { %278 = vst [vmem:[%s1440_s24 + $0x70] sm:$0xff] %v277_v14  ;;  %v309_v30 = vld [vmem:[%s1435_s23 + $0x1e0] sm:$0xff]  ;;  %v311_v31 = vld [vmem:[%s1435_s23 + $0x1f0] sm:$0xff] }
  0x22   : > { %280 = vst [vmem:[%s1440_s24 + $0x78] sm:$0xff] %v279_v15  ;;  %v313_v32 = vld [vmem:[%s1435_s23 + $0x200] sm:$0xff]  ;;  %v315_v33 = vld [vmem:[%s1435_s23 + $0x210] sm:$0xff] }
  0x23   : > { %282 = vst [vmem:[%s1440_s24 + $0x80] sm:$0xff] %v281_v16  ;;  %v317_v34 = vld [vmem:[%s1435_s23 + $0x220] sm:$0xff]  ;;  %v319_v35 = vld [vmem:[%s1435_s23 + $0x230] sm:$0xff] }
  0x24   : > { %284 = vst [vmem:[%s1440_s24 + $0x88] sm:$0xff] %v283_v17  ;;  %v321_v36 = vld [vmem:[%s1435_s23 + $0x240] sm:$0xff]  ;;  %v323_v37 = vld [vmem:[%s1435_s23 + $0x250] sm:$0xff] }
  0x25   : > { %286 = vst [vmem:[%s1440_s24 + $0x90] sm:$0xff] %v285_v18  ;;  %v325_v38 = vld [vmem:[%s1435_s23 + $0x260] sm:$0xff]  ;;  %v327_v39 = vld [vmem:[%s1435_s23 + $0x270] sm:$0xff] }
  0x26   : > { %288 = vst [vmem:[%s1440_s24 + $0x98] sm:$0xff] %v287_v19  ;;  %v329_v40 = vld [vmem:[%s1435_s23 + $0x280] sm:$0xff]  ;;  %v331_v41 = vld [vmem:[%s1435_s23 + $0x290] sm:$0xff] }
  0x27   : > { %290 = vst [vmem:[%s1440_s24 + $0xa0] sm:$0xff] %v289_v20  ;;  %v333_v42 = vld [vmem:[%s1435_s23 + $0x2a0] sm:$0xff]  ;;  %v335_v43 = vld [vmem:[%s1435_s23 + $0x2b0] sm:$0xff] }
  0x28   : > { %292 = vst [vmem:[%s1440_s24 + $0xa8] sm:$0xff] %v291_v21  ;;  %v337_v44 = vld [vmem:[%s1435_s23 + $0x2c0] sm:$0xff]  ;;  %v339_v45 = vld [vmem:[%s1435_s23 + $0x2d0] sm:$0xff] }
  0x29   : > { %294 = vst [vmem:[%s1440_s24 + $0xb0] sm:$0xff] %v293_v22  ;;  %v341_v46 = vld [vmem:[%s1435_s23 + $0x2e0] sm:$0xff]  ;;  %v343_v47 = vld [vmem:[%s1435_s23 + $0x2f0] sm:$0xff] }
  0x2a   : > { %296 = vst [vmem:[%s1440_s24 + $0xb8] sm:$0xff] %v295_v23  ;;  %v345_v48 = vld [vmem:[%s1435_s23 + $0x300] sm:$0xff]  ;;  %v347_v49 = vld [vmem:[%s1435_s23 + $0x310] sm:$0xff] }
  0x2b   : > { %298 = vst [vmem:[%s1440_s24 + $0xc0] sm:$0xff] %v297_v24  ;;  %v349_v50 = vld [vmem:[%s1435_s23 + $0x320] sm:$0xff]  ;;  %v351_v51 = vld [vmem:[%s1435_s23 + $0x330] sm:$0xff] }
  0x2c   : > { %300 = vst [vmem:[%s1440_s24 + $0xc8] sm:$0xff] %v299_v25  ;;  %v353_v52 = vld [vmem:[%s1435_s23 + $0x340] sm:$0xff]  ;;  %v355_v53 = vld [vmem:[%s1435_s23 + $0x350] sm:$0xff] }
  0x2d   : > { %302 = vst [vmem:[%s1440_s24 + $0xd0] sm:$0xff] %v301_v26  ;;  %v357_v54 = vld [vmem:[%s1435_s23 + $0x360] sm:$0xff] }
  0x2e   : > { %304 = vst [vmem:[%s1440_s24 + $0xd8] sm:$0xff] %v303_v27 }
  0x2f   : > { %306 = vst [vmem:[%s1440_s24 + $0xe0] sm:$0xff] %v305_v28 }
  0x30   : > { %308 = vst [vmem:[%s1440_s24 + $0xe8] sm:$0xff] %v307_v29 }
  0x31   : > { %310 = vst [vmem:[%s1440_s24 + $0xf0] sm:$0xff] %v309_v30 }
  0x32   : > { %312 = vst [vmem:[%s1440_s24 + $0xf8] sm:$0xff] %v311_v31 }
  0x33   : > { %314 = vst [vmem:[%s1440_s24 + $0x100] sm:$0xff] %v313_v32 }
  0x34   : > { %316 = vst [vmem:[%s1440_s24 + $0x108] sm:$0xff] %v315_v33 }
  0x35   : > { %318 = vst [vmem:[%s1440_s24 + $0x110] sm:$0xff] %v317_v34 }
  0x36   : > { %320 = vst [vmem:[%s1440_s24 + $0x118] sm:$0xff] %v319_v35 }
  0x37   : > { %322 = vst [vmem:[%s1440_s24 + $0x120] sm:$0xff] %v321_v36 }
  0x38   : > { %324 = vst [vmem:[%s1440_s24 + $0x128] sm:$0xff] %v323_v37 }
  0x39   : > { %326 = vst [vmem:[%s1440_s24 + $0x130] sm:$0xff] %v325_v38 }
  0x3a   : > { %328 = vst [vmem:[%s1440_s24 + $0x138] sm:$0xff] %v327_v39 }
  0x3b   : > { %330 = vst [vmem:[%s1440_s24 + $0x140] sm:$0xff] %v329_v40 }
  0x3c   : > { %332 = vst [vmem:[%s1440_s24 + $0x148] sm:$0xff] %v331_v41 }
  0x3d   : > { %334 = vst [vmem:[%s1440_s24 + $0x150] sm:$0xff] %v333_v42 }
  0x3e   : > { %336 = vst [vmem:[%s1440_s24 + $0x158] sm:$0xff] %v335_v43 }
  0x3f   : > { %338 = vst [vmem:[%s1440_s24 + $0x160] sm:$0xff] %v337_v44 }
  0x40   : > { %340 = vst [vmem:[%s1440_s24 + $0x168] sm:$0xff] %v339_v45 }
  0x41   : > { %342 = vst [vmem:[%s1440_s24 + $0x170] sm:$0xff] %v341_v46 }
  0x42   : > { %344 = vst [vmem:[%s1440_s24 + $0x178] sm:$0xff] %v343_v47 }
  0x43   : > { %346 = vst [vmem:[%s1440_s24 + $0x180] sm:$0xff] %v345_v48 }
  0x44   : > { %348 = vst [vmem:[%s1440_s24 + $0x188] sm:$0xff] %v347_v49 }
  0x45   : > { %350 = vst [vmem:[%s1440_s24 + $0x190] sm:$0xff] %v349_v50 }
  0x46   : > { %352 = vst [vmem:[%s1440_s24 + $0x198] sm:$0xff] %v351_v51 }
  0x47   : > { %354 = vst [vmem:[%s1440_s24 + $0x1a0] sm:$0xff] %v353_v52 }
  0x48   : > { %356 = vst [vmem:[%s1440_s24 + $0x1a8] sm:$0xff] %v355_v53 }
  0x49   : > { %358 = vst [vmem:[%s1440_s24 + $0x1b0] sm:$0xff] %v357_v54 }
  0x4a PF: > { %p1026_p7 = scmp.ge.s32.totalorder %s1377_s11, 1  ;;  %p363_p8 = scmp.lt.s32.totalorder %s1377_s11, 3 }
  0x4c   : > { %p364_p9 = pnand %p1026_p7, %p363_p8 }
  0x4d   : > { %s370_s25 = sand.u32 (!%p364_p9), 1, %s1369_s9  }
  0x4e   : > { %367 = sbr.rel (%p364_p9) target bundleno = 310 (0x136), region = 62 }
  0x4f   : > { %s1328_s26 = smul.u32 (!%p364_p9), 440, %s370_s25 }
  0x51   : > { %s1554_s27 = scalar_lea.vmem (!%p364_p9), [#allocation2], %s1328_s26 }
  0x53   : > { %vm768_vm0 = vcmask 1040384   ;;  %v1101_v55 = vld [vmem:[%s1554_s27 + $0x70] sm:$0xf]  ;;  %v1287_v56 = vld [vmem:[%s1554_s27 + $0x74] sm:$0xf0]  ;;  %v1379_v18 = vmov 0  }
  0x54   : > { %v1165_v57 = vld [vmem:[%s1554_s27 + $0xf0] sm:$0xf]  ;;  %v1102_v58 = vor.u32 %v1287_v56, %v1101_v55  ;;  %v1303_v59 = vld [vmem:[%s1554_s27 + $0xf4] sm:$0xf0]  ;;  %v1093_v0 = vld [vmem:[%s1554_s27 + $0x60] sm:$0xf] }
  0x55   : > { %v1229_v60 = vld [vmem:[%s1554_s27 + $0x170] sm:$0xf]  ;;  %v1319_v61 = vld [vmem:[%s1554_s27 + $0x174] sm:$0xf0]  ;;  %v1166_v62 = vor.u32 %v1303_v59, %v1165_v57  ;;  %v1285_v1 = vld [vmem:[%s1554_s27 + $0x64] sm:$0xf0] }
  0x56   : > { %v1230_v63 = vor.u32 %v1319_v61, %v1229_v60  ;;  %v1157_v2 = vld [vmem:[%s1554_s27 + $0xe0] sm:$0xf]  ;;  %777 = vmatpush.bf16.msra.mxu0 %v1102_v58  ;;  %v1094_v3 = vor.u32 %v1285_v1, %v1093_v0  ;;  %v1301_v4 = vld [vmem:[%s1554_s27 + $0xe4] sm:$0xf0]  ;;  %v1085_v9 = vld [vmem:[%s1554_s27 + $0x50] sm:$0xf] }
  0x57   : > { %v1221_v5 = vld [vmem:[%s1554_s27 + $0x160] sm:$0xf]  ;;  %v1317_v6 = vld [vmem:[%s1554_s27 + $0x164] sm:$0xf0]  ;;  %795 = vmatpush.bf16.msra.mxu1 %v1166_v62  ;;  %v1158_v7 = vor.u32 %v1301_v4, %v1157_v2  ;;  %v1283_v10 = vld [vmem:[%s1554_s27 + $0x54] sm:$0xf0] }
  0x58   : > { %813 = vmatpush.bf16.msra.mxu2 %v1230_v63  ;;  %v1222_v8 = vor.u32 %v1317_v6, %v1221_v5  ;;  %v1149_v11 = vld [vmem:[%s1554_s27 + $0xd0] sm:$0xf]  ;;  %v1299_v12 = vld [vmem:[%s1554_s27 + $0xd4] sm:$0xf0]  ;;  %v1086_v16 = vor.u32 %v1283_v10, %v1085_v9  ;;  %v1579_v19 = vsel %vm768_vm0, 65535, %v1379_v18  ;;  %vm761_vm1 = vcmask 400384  }
  0x59   : > { %v1213_v13 = vld [vmem:[%s1554_s27 + $0x150] sm:$0xf]  ;;  %v1315_v14 = vld [vmem:[%s1554_s27 + $0x154] sm:$0xf0]  ;;  %v1150_v20 = vor.u32 %v1299_v12, %v1149_v11  ;;  %v1077_v22 = vld [vmem:[%s1554_s27 + $0x40] sm:$0xf] }
  0x5a   : > { %v1575_v15 = vld [vmem:[%s1554_s27 + $0x1b0] sm:$0x11]  ;;  %778 = vmatpush.bf16.msra.mxu0 %v1094_v3  ;;  %v1214_v21 = vor.u32 %v1315_v14, %v1213_v13  ;;  %v1281_v23 = vld [vmem:[%s1554_s27 + $0x44] sm:$0xf0]  ;;  %v1141_v24 = vld [vmem:[%s1554_s27 + $0xc0] sm:$0xf] }
  0x5b   : > { %v649_v17 = vunpack.c.l.b16 %v1575_v15  ;;  %796 = vmatpush.bf16.msra.mxu1 %v1158_v7  ;;  %v1297_v26 = vld [vmem:[%s1554_s27 + $0xc4] sm:$0xf0]  ;;  %v1205_v27 = vld [vmem:[%s1554_s27 + $0x140] sm:$0xf]  ;;  %v1078_v32 = vor.u32 %v1281_v23, %v1077_v22  ;;  %v1069_v35 = vld [vmem:[%s1554_s27 + $0x30] sm:$0xf] }
  0x5c   : > { %814 = vmatpush.bf16.msra.mxu2 %v1222_v8  ;;  %v1313_v28 = vld [vmem:[%s1554_s27 + $0x144] sm:$0xf0]  ;;  %v1253_v29 = vld [vmem:[%s1554_s27 + $0x1a0] sm:$0xf]  ;;  %v1142_v33 = vor.u32 %v1297_v26, %v1141_v24  ;;  %v1279_v36 = vld [vmem:[%s1554_s27 + $0x34] sm:$0xf0]  ;;  %v650_v8 = vunpack.c.h.b16 %v1575_v15 }
  0x5d   : > { %v705_v25 = vpack.c.b16 %v649_v17, %v649_v17  ;;  %v1325_v30 = vld [vmem:[%s1554_s27 + $0x1a4] sm:$0xf0]  ;;  %v1206_v34 = vor.u32 %v1313_v28, %v1205_v27  ;;  %v1133_v37 = vld [vmem:[%s1554_s27 + $0xb0] sm:$0xf]  ;;  %v1295_v39 = vld [vmem:[%s1554_s27 + $0xb4] sm:$0xf0]  ;;  %v1070_v44 = vor.u32 %v1279_v36, %v1069_v35 }
  0x5e   : > { %779 = vmatpush.bf16.msra.mxu0 %v1086_v16  ;;  %v1254_v38 = vor.u32 %v1325_v30, %v1253_v29  ;;  %v1197_v40 = vld [vmem:[%s1554_s27 + $0x130] sm:$0xf]  ;;  %v1311_v41 = vld [vmem:[%s1554_s27 + $0x134] sm:$0xf0]  ;;  %v1134_v45 = vor.u32 %v1295_v39, %v1133_v37  ;;  %v1061_v47 = vld [vmem:[%s1554_s27 + $0x20] sm:$0xf] }
  0x5f   : > { %v772_v31 = vand.u32 %v1579_v19, %v705_v25  ;;  %797 = vmatpush.bf16.msra.mxu1 %v1150_v20  ;;  %v1245_v42 = vld [vmem:[%s1554_s27 + $0x190] sm:$0xf]  ;;  %v1323_v43 = vld [vmem:[%s1554_s27 + $0x194] sm:$0xf0]  ;;  %v1198_v46 = vor.u32 %v1311_v41, %v1197_v40  ;;  %v1277_v48 = vld [vmem:[%s1554_s27 + $0x24] sm:$0xf0]  ;;  %v706_v25 = vpack.c.b16 %v650_v8, %v650_v8 }
  0x60   : > { %815 = vmatpush.bf16.msra.mxu2 %v1214_v21  ;;  %v1125_v49 = vld [vmem:[%s1554_s27 + $0xa0] sm:$0xf]  ;;  %v1246_v50 = vor.u32 %v1323_v43, %v1245_v42  ;;  %v1293_v51 = vld [vmem:[%s1554_s27 + $0xa4] sm:$0xf0]  ;;  %v1062_v56 = vor.u32 %v1277_v48, %v1061_v47  ;;  %v1269_v57 = vld [vmem:[%s1766_s1 + $0xc] sm:$0xf] }
  0x61   : > { %835 = vmatpush.bf16.msra.mxu3 %v772_v31  ;;  %v1189_v52 = vld [vmem:[%s1554_s27 + $0x120] sm:$0xf]  ;;  %v1309_v53 = vld [vmem:[%s1554_s27 + $0x124] sm:$0xf0]  ;;  %v1286_v58 = vld [vmem:[%s1554_s27 + $0x74] sm:$0xf]  ;;  %v1126_v60 = vor.u32 %v1293_v51, %v1125_v49  ;;  %v775_v43 = vand.u32 %v1579_v19, %v706_v25 }
  0x62   : > { %780 = vmatpush.bf16.msra.mxu0 %v1078_v32  ;;  %v1237_v54 = vld [vmem:[%s1554_s27 + $0x180] sm:$0xf]  ;;  %v1321_v55 = vld [vmem:[%s1554_s27 + $0x184] sm:$0xf0]  ;;  %v1103_v59 = vld [vmem:[%s1554_s27 + $0x78] sm:$0xf0]  ;;  %v1190_v61 = vor.u32 %v1309_v53, %v1189_v52 }
  0x63   : > { %798 = vmatpush.bf16.msra.mxu1 %v1142_v33  ;;  %v1053_v62 = vld [vmem:[%s1554_s27 + $0x10] sm:$0xf]  ;;  %v1275_v63 = vld [vmem:[%s1554_s27 + $0x14] sm:$0xf0]  ;;  %v1238_v0 = vor.u32 %v1321_v55, %v1237_v54  ;;  %v1039_v1 = vld [vmem:[%s1766_s1 + $0x18] sm:$0xf0]  ;;  %v1106_v6 = vor.u32 %v1286_v58, %v1103_v59 }
  0x64   : > { %816 = vmatpush.bf16.msra.mxu2 %v1206_v34  ;;  %v1117_v2 = vld [vmem:[%s1554_s27 + $0x90] sm:$0xf]  ;;  %v1291_v3 = vld [vmem:[%s1554_s27 + $0x94] sm:$0xf0]  ;;  %v1045_v7 = vld [vmem:[%s1554_s27] sm:$0xf]  ;;  %v1054_v9 = vor.u32 %v1275_v63, %v1053_v62  ;;  %v1625_v13 = vor.u32 %v1269_v57, %v1039_v1 }
  0x65   : > { %836 = vmatpush.bf16.msra.mxu3 %v1254_v38  ;;  %v1181_v4 = vld [vmem:[%s1554_s27 + $0x110] sm:$0xf]  ;;  %v1307_v5 = vld [vmem:[%s1554_s27 + $0x114] sm:$0xf0]  ;;  %v1273_v10 = vld [vmem:[%s1554_s27 + $0x4] sm:$0xf0]  ;;  %v1118_v14 = vor.u32 %v1291_v3, %v1117_v2 }
  0x66   : > { %781 = vmatpush.bf16.msra.mxu0 %v1070_v44  ;;  %v1284_v11 = vld [vmem:[%s1554_s27 + $0x64] sm:$0xf]  ;;  %v1095_v12 = vld [vmem:[%s1554_s27 + $0x68] sm:$0xf0]  ;;  %v1109_v16 = vld [vmem:[%s1554_s27 + $0x80] sm:$0xf]  ;;  %v1182_v20 = vor.u32 %v1307_v5, %v1181_v4  ;;  %v1046_v28 = vor.u32 %v1273_v10, %v1045_v7 }
  0x67   : > { %799 = vmatpush.bf16.msra.mxu1 %v1134_v45  ;;  %v1289_v17 = vld [vmem:[%s1554_s27 + $0x84] sm:$0xf0]  ;;  %v1173_v18 = vld [vmem:[%s1554_s27 + $0x100] sm:$0xf]  ;;  %v1302_v21 = vld [vmem:[%s1554_s27 + $0xf4] sm:$0xf]  ;;  %v1098_v23 = vor.u32 %v1284_v11, %v1095_v12 }
  0x68   : > { %817 = vmatpush.bf16.msra.mxu2 %v1198_v46  ;;  %v1305_v15 = vld [vmem:[%s1554_s27 + $0x104] sm:$0xf0]  ;;  %v1167_v22 = vld [vmem:[%s1554_s27 + $0xf8] sm:$0xf0]  ;;  %v1318_v26 = vld [vmem:[%s1554_s27 + $0x174] sm:$0xf]  ;;  %v1110_v32 = vor.u32 %v1289_v17, %v1109_v16 }
  0x69   : > { %837 = vmatpush.bf16.msra.mxu3 %v1246_v50  ;;  %v1029_v24 = vld [vmem:[%s1766_s1] sm:$0xf]  ;;  %v1231_v27 = vld [vmem:[%s1554_s27 + $0x178] sm:$0xf0]  ;;  %v1270_v29 = vld [vmem:[%s1766_s1 + $0xc] sm:$0xf0]  ;;  %v1170_v36 = vor.u32 %v1302_v21, %v1167_v22  ;;  %v1174_v37 = vor.u32 %v1305_v15, %v1173_v18 }
  0x6a   : > { %782 = vmatpush.bf16.msra.mxu0 %v1062_v56  ;;  %v1268_v30 = vld [vmem:[%s1766_s1 + $0x4] sm:$0xf]  ;;  %v1031_v31 = vld [vmem:[%s1766_s1 + $0x10] sm:$0xf0]  ;;  %v1037_v33 = vld [vmem:[%s1766_s1 + $0x8] sm:$0xf]  ;;  %v1234_v39 = vor.u32 %v1318_v26, %v1231_v27  ;;  %v1659_v42 = vor.u32 %v1270_v29, %v1029_v24 }
  0x6b   : > { %800 = vmatpush.bf16.msra.mxu1 %v1126_v60  ;;  %v1282_v34 = vld [vmem:[%s1554_s27 + $0x54] sm:$0xf]  ;;  %v1087_v35 = vld [vmem:[%s1554_s27 + $0x58] sm:$0xf0]  ;;  %v1271_v38 = vld [vmem:[%s1766_s1 + $0x14] sm:$0xf0]  ;;  %v1664_v46 = vor.u32 %v1268_v30, %v1031_v31 }
  0x6c   : > { %818 = vmatpush.bf16.msra.mxu2 %v1190_v61  ;;  %v1300_v40 = vld [vmem:[%s1554_s27 + $0xe4] sm:$0xf]  ;;  %v1159_v41 = vld [vmem:[%s1554_s27 + $0xe8] sm:$0xf0]  ;;  %v1090_v47 = vor.u32 %v1282_v34, %v1087_v35  ;;  %v1668_v50 = vor.u32 %v1271_v38, %v1037_v33  ;;  %v1298_v55 = vld [vmem:[%s1554_s27 + $0xd4] sm:$0xf] }
  0x6d   : > { %838 = vmatpush.bf16.msra.mxu3 %v1238_v0  ;;  %v1316_v44 = vld [vmem:[%s1554_s27 + $0x164] sm:$0xf]  ;;  %v1223_v45 = vld [vmem:[%s1554_s27 + $0x168] sm:$0xf0]  ;;  %v1162_v19 = vor.u32 %v1300_v40, %v1159_v41  ;;  %v1151_v56 = vld [vmem:[%s1554_s27 + $0xd8] sm:$0xf0] }
  0x6e   : > { %783 = vmatpush.bf16.msra.mxu0 %v1054_v9  ;;  %v1324_v48 = vld [vmem:[%s1554_s27 + $0x1a4] sm:$0xf]  ;;  %v1255_v49 = vld [vmem:[%s1554_s27 + $0x1a8] sm:$0xf0]  ;;  %v1226_v53 = vor.u32 %v1316_v44, %v1223_v45  ;;  %v1314_v58 = vld [vmem:[%s1554_s27 + $0x154] sm:$0xf]  ;;  %v1154_v2 = vor.u32 %v1298_v55, %v1151_v56 }
  0x6f   : > { %801 = vmatpush.bf16.msra.mxu1 %v1118_v14  ;;  %v1280_v51 = vld [vmem:[%s1554_s27 + $0x44] sm:$0xf]  ;;  %v1079_v52 = vld [vmem:[%s1554_s27 + $0x48] sm:$0xf0]  ;;  %v1258_v57 = vor.u32 %v1324_v48, %v1255_v49  ;;  %v1215_v59 = vld [vmem:[%s1554_s27 + $0x158] sm:$0xf0] }
  0x70   : > { %1259 = vmatmul.msk.bf16.vlgmr.msra.gmra.mxu3 %vm761_vm1, %v1625_v13  ;;  %819 = vmatpush.bf16.msra.mxu2 %v1182_v20  ;;  %v1675_v54 = vld [vmem:[%s1766_s1 + $0x28] sm:$0xff]  ;;  %v1082_v60 = vor.u32 %v1280_v51, %v1079_v52  ;;  %v1247_v62 = vld [vmem:[%s1554_s27 + $0x198] sm:$0xf0]  ;;  %v1218_v3 = vor.u32 %v1314_v58, %v1215_v59  ;;  %v1296_v4 = vld [vmem:[%s1554_s27 + $0xc4] sm:$0xf]  ;;  %s1326_s9 = sshll.u32 (%p1425_p5), %s1020_s12, 4 }
  0x71   : > { %849 = vmatpush.bf16.msrb.mxu3 %v1106_v6  ;;  %v1322_v61 = vld [vmem:[%s1554_s27 + $0x194] sm:$0xf]  ;;  %v471_v63 = vunpack.c.h.b16 %v1675_v54  ;;  %v1071_v1 = vld [vmem:[%s1554_s27 + $0x38] sm:$0xf0]  ;;  %v1143_v5 = vld [vmem:[%s1554_s27 + $0xc8] sm:$0xf0]  ;;  %s936_s3 = scalar_lea.vmem (%p1425_p5), %s1767_s2, %s1326_s9 }
  0x72   : > { %784 = vmatpush.bf16.msra.mxu0 %v1046_v28  ;;  %v1278_v0 = vld [vmem:[%s1554_s27 + $0x34] sm:$0xf]  ;;  %v1312_v6 = vld [vmem:[%s1554_s27 + $0x144] sm:$0xf]  ;;  %v1207_v7 = vld [vmem:[%s1554_s27 + $0x148] sm:$0xf0]  ;;  %v1250_v8 = vor.u32 %v1322_v61, %v1247_v62  ;;  %v1146_v18 = vor.u32 %v1296_v4, %v1143_v5  ;;  %v470_v28 = vunpack.c.l.b16 %v1675_v54 }
  0x73   : > { %802 = vmatpush.bf16.msra.mxu1 %v1110_v32  ;;  %v1074_v9 = vor.u32 %v1278_v0, %v1071_v1  ;;  %v397_v10 = vld [vmem:[%s1766_s1 + $0x20] sm:$0xff]  ;;  %v1698_v14 = vpack.c.b16 %v471_v63, %v471_v63  ;;  %v1210_v20 = vor.u32 %v1312_v6, %v1207_v7  ;;  %v1294_v15 = vld [vmem:[%s1554_s27 + $0xb4] sm:$0xf]  ;;  %v1135_v21 = vld [vmem:[%s1554_s27 + $0xb8] sm:$0xf0] }
  0x74   : > { %820 = vmatpush.bf16.msra.mxu2 %v1174_v37  ;;  %v1320_v11 = vld [vmem:[%s1554_s27 + $0x184] sm:$0xf]  ;;  %v1239_v12 = vld [vmem:[%s1554_s27 + $0x188] sm:$0xf0]  ;;  %v468_v22 = vunpack.c.l.b16 %v397_v10  ;;  %v1199_v24 = vld [vmem:[%s1554_s27 + $0x138] sm:$0xf0]  ;;  %v469_v27 = vunpack.c.h.b16 %v397_v10  ;;  %v1138_v31 = vor.u32 %v1294_v15, %v1135_v21  ;;  %v478_v40 = vpack.c.b16 %v470_v28, %v470_v28 }
  0x75   : > { %850 = vmatpush.bf16.msrb.mxu3 %v1098_v23  ;;  %785 = vmatmul.bf16.vlgmr.msra.gmra.mxu0 %v1659_v42  ;;  %v1276_v16 = vld [vmem:[%s1554_s27 + $0x24] sm:$0xf]  ;;  %v1063_v17 = vld [vmem:[%s1554_s27 + $0x28] sm:$0xf0]  ;;  %v1310_v23 = vld [vmem:[%s1554_s27 + $0x134] sm:$0xf]  ;;  %v1242_v25 = vor.u32 %v1320_v11, %v1239_v12 }
  0x76   : > { %867 = vmatpush.bf16.msrb.mxu0 %v1170_v36  ;;  %803 = vmatmul.bf16.vlgmr.msra.gmra.mxu1 %v1664_v46  ;;  %v1066_v26 = vor.u32 %v1276_v16, %v1063_v17  ;;  %v1274_v29 = vld [vmem:[%s1554_s27 + $0x14] sm:$0xf]  ;;  %v1055_v30 = vld [vmem:[%s1554_s27 + $0x18] sm:$0xf0]  ;;  %v1202_v32 = vor.u32 %v1310_v23, %v1199_v24  ;;  %v1292_v33 = vld [vmem:[%s1554_s27 + $0xa4] sm:$0xf]  ;;  %v476_v35 = vpack.c.b16 %v468_v22, %v468_v22 }
  0x77   : > { %885 = vmatpush.bf16.msrb.mxu1 %v1234_v39  ;;  %821 = vmatmul.bf16.vlgmr.msra.gmra.mxu2 %v1668_v50  ;;  %v1127_v34 = vld [vmem:[%s1554_s27 + $0xa8] sm:$0xf0]  ;;  %v1308_v36 = vld [vmem:[%s1554_s27 + $0x124] sm:$0xf]  ;;  %v477_v38 = vpack.c.b16 %v469_v27, %v469_v27  ;;  %v1058_v39 = vor.u32 %v1274_v29, %v1055_v30  ;;  %v1119_v48 = vld [vmem:[%s1554_s27 + $0x98] sm:$0xf0] }
  0x78   : > { %907 = vmatpush.bf16.msrb.mxu2 %v775_v43  ;;  %v1191_v37 = vld [vmem:[%s1554_s27 + $0x128] sm:$0xf0]  ;;  %v1272_v41 = vld [vmem:[%s1554_s27 + $0x4] sm:$0xf]  ;;  %v1130_v44 = vor.u32 %v1292_v33, %v1127_v34  ;;  %v1306_v49 = vld [vmem:[%s1554_s27 + $0x114] sm:$0xf] }
  0x79   : > { %851 = vmatpush.bf16.msrb.mxu3 %v1090_v47  ;;  %v1047_v43 = vld [vmem:[%s1554_s27 + $0x8] sm:$0xf0]  ;;  %v1194_v45 = vor.u32 %v1308_v36, %v1191_v37  ;;  %v1290_v47 = vld [vmem:[%s1554_s27 + $0x94] sm:$0xf]  ;;  %v1183_v51 = vld [vmem:[%s1554_s27 + $0x118] sm:$0xf0] }
  0x7a   : > { %868 = vmatpush.bf16.msrb.mxu0 %v1162_v19  ;;  %v1050_v52 = vor.u32 %v1272_v41, %v1047_v43  ;;  %v1122_v19 = vor.u32 %v1290_v47, %v1119_v48  ;;  %v1288_v54 = vld [vmem:[%s1554_s27 + $0x84] sm:$0xf]  ;;  %v1111_v55 = vld [vmem:[%s1554_s27 + $0x88] sm:$0xf0] }
  0x7b   : > { %886 = vmatpush.bf16.msrb.mxu1 %v1226_v53  ;;  %v1186_v53 = vor.u32 %v1306_v49, %v1183_v51  ;;  %v1304_v56 = vld [vmem:[%s1554_s27 + $0x104] sm:$0xf]  ;;  %v1114_v58 = vor.u32 %v1288_v54, %v1111_v55 }
  0x7c   : > { %908 = vmatpush.bf16.msrb.mxu2 %v1258_v57  ;;  %v1175_v57 = vld [vmem:[%s1554_s27 + $0x108] sm:$0xf0]  ;;  %s1329_s27 = smul.u32 48, %s370_s25 }
  0x7d   : > { %852 = vmatpush.bf16.msrb.mxu3 %v1082_v60  ;;  %v1178_v59 = vor.u32 %v1304_v56, %v1175_v57 }
  0x7e   : > { %869 = vmatpush.bf16.msrb.mxu0 %v1154_v2  ;;  %s1734_s29 = scalar_lea.vmem [#allocation3], %s1329_s27 }
  0x7f   : > { %887 = vmatpush.bf16.msrb.mxu1 %v1218_v3 }
  0x80   : > { %909 = vmatpush.bf16.msrb.mxu2 %v1250_v8  ;;  %1260 = vmatmul.msk.bf16.gmra.mxu3 %vm761_vm1, %v1698_v14 }
  0x81   : > { %853 = vmatpush.bf16.msrb.mxu3 %v1074_v9 }
  0x82   : > { %870 = vmatpush.bf16.msrb.mxu0 %v1146_v18 }
  0x83   : > { %888 = vmatpush.bf16.msrb.mxu1 %v1210_v20 }
  0x84   : > { %910 = vmatpush.bf16.msrb.mxu2 %v1242_v25 }
  0x85   : > { %854 = vmatpush.bf16.msrb.mxu3 %v1066_v26  ;;  %790 = vmatmul.bf16.gmra.mxu0 %v476_v35 }
  0x86   : > { %871 = vmatpush.bf16.msrb.mxu0 %v1138_v31  ;;  %808 = vmatmul.bf16.gmra.mxu1 %v477_v38 }
  0x87   : > { %889 = vmatpush.bf16.msrb.mxu1 %v1202_v32  ;;  %826 = vmatmul.bf16.gmra.mxu2 %v478_v40 }
  0x89   : > { %855 = vmatpush.bf16.msrb.mxu3 %v1058_v39 }
  0x8a   : > { %872 = vmatpush.bf16.msrb.mxu0 %v1130_v44 }
  0x8b   : > { %890 = vmatpush.bf16.msrb.mxu1 %v1194_v45 }
  0x8d   : > { %856 = vmatpush.bf16.msrb.mxu3 %v1050_v52 }
  0x8e   : > { %873 = vmatpush.bf16.msrb.mxu0 %v1122_v19 }
  0x8f   : > { %891 = vmatpush.bf16.msrb.mxu1 %v1186_v53 }
  0x90   : > { %857 = vmatmul.bf16.vlgmr.msrb.gmra.mxu3 %v1659_v42 }
  0x92   : > { %874 = vmatpush.bf16.msrb.mxu0 %v1114_v58 }
  0x93   : > { %892 = vmatpush.bf16.msrb.mxu1 %v1178_v59 }
  0x95   : > { %875 = vmatmul.bf16.vlgmr.msrb.gmra.mxu0 %v1664_v46 }
  0x96   : > { %893 = vmatmul.bf16.vlgmr.msrb.gmra.mxu1 %v1668_v50 }
  0x97   : > { %1261 = vmatmul.msk.bf16.vlgmr.msrb.gmra.mxu2 %vm761_vm1, %v1625_v13 }
  0xa0   : > { %862 = vmatmul.bf16.gmra.mxu3 %v476_v35 }
  0xa5   : > { %880 = vmatmul.bf16.gmra.mxu0 %v477_v38 }
  0xa6   : > { %898 = vmatmul.bf16.gmra.mxu1 %v478_v40 }
  0xa7   : > { %1262 = vmatmul.msk.bf16.gmra.mxu2 %vm761_vm1, %v1698_v14 }
  0xf2   : > { %v786_v61 = vpop.f32.mrf.mxu0 }
  0xf3   : > { %v840_v60 = vpop.f32.mrf.mxu3  ;;  %v804_v62 = vpop.f32.mrf.mxu1 }
  0xf4   : > { %v805_v63 = vadd.f32 %v804_v62, %v786_v61 }
  0xfa   : > { %v822_v42 = vpop.f32.mrf.mxu2  ;;  %v788_v1 = vpop.f32.mrf.mxu0 }
  0xfb   : > { %v842_v0 = vpop.f32.mrf.mxu3  ;;  %v823_v46 = vadd.f32 %v822_v42, %v805_v63  ;;  %v806_v50 = vpop.f32.mrf.mxu1 }
  0xfc   : > { %v807_v13 = vadd.f32 %v806_v50, %v788_v1 }
  0xfd   : > { %v841_v2 = vadd.f32 %v840_v60, %v823_v46 }
  0xff   : > { %921 = vst [vmem:[%s1734_s29] sm:$0xff] %v841_v2 }
 0x102   : > { %v824_v3 = vpop.f32.mrf.mxu2  ;;  %v791_v6 = vpop.f32.mrf.mxu0 }
 0x103   : > { %v845_v4 = vpop.f32.mrf.mxu3  ;;  %v825_v5 = vadd.f32 %v824_v3, %v807_v13  ;;  %v809_v7 = vpop.f32.mrf.mxu1 }
 0x104   : > { %v810_v9 = vadd.f32 %v809_v7, %v791_v6 }
 0x105   : > { %v843_v8 = vadd.f32 %v842_v0, %v825_v5 }
 0x106   : > { %v949_v45 = vld [vmem:[%s1734_s29] sm:$0xff] (%p1425_p5) }
 0x107   : > { %923 = vst [vmem:[%s1734_s29 + $0x10] sm:$0xff] %v843_v8 }
 0x108   : > { %950 = vst [vmem:[%s936_s3] sm:$0xff] (%p1425_p5), %v949_v45 }
 0x10a   : > { %v827_v10 = vpop.f32.mrf.mxu2  ;;  %v793_v14 = vpop.f32.mrf.mxu0 }
 0x10b   : > { %v847_v11 = vpop.f32.mrf.mxu3  ;;  %v828_v12 = vadd.f32 %v827_v10, %v810_v9  ;;  %v811_v16 = vpop.f32.mrf.mxu1 }
 0x10d   : > { %v846_v17 = vadd.f32 %v845_v4, %v828_v12 }
 0x10e   : > { %v953_v48 = vld [vmem:[%s1734_s29 + $0x10] sm:$0xff] (%p1425_p5) }
 0x10f   : > { %925 = vst [vmem:[%s1734_s29 + $0x20] sm:$0xff] %v846_v17 }
 0x110   : > { %954 = vst [vmem:[%s936_s3 + $0x20] sm:$0xff] (%p1425_p5), %v953_v48 }
 0x112   : > { %v829_v18 = vpop.f32.mrf.mxu2  ;;  %v876_v15 = vpop.f32.mrf.mxu0 }
 0x113   : > { %v858_v20 = vpop.f32.mrf.mxu3  ;;  %v894_v21 = vpop.f32.mrf.mxu1 }
 0x114   : > { %v877_v22 = vadd.f32 %v876_v15, %v858_v20 }
 0x116   : > { %v895_v23 = vadd.f32 %v894_v21, %v877_v22  ;;  %v957_v51 = vld [vmem:[%s1734_s29 + $0x20] sm:$0xff] (%p1425_p5) }
 0x117   : > { %958 = vst [vmem:[%s936_s3 + $0x40] sm:$0xff] (%p1425_p5), %v957_v51 }
 0x11a   : > { %v912_v25 = vpop.f32.mrf.mxu2  ;;  %v878_v27 = vpop.f32.mrf.mxu0 }
 0x11b   : > { %v860_v24 = vpop.f32.mrf.mxu3  ;;  %v913_v26 = vadd.f32 %v912_v25, %v895_v23  ;;  %v896_v28 = vpop.f32.mrf.mxu1 }
 0x11c   : > { %v879_v29 = vadd.f32 %v878_v27, %v860_v24 }
 0x11d   : > { %922 = vst [vmem:[%s1734_s29 + $0x8] sm:$0xff] %v913_v26 }
 0x11e   : > { %v897_v30 = vadd.f32 %v896_v28, %v879_v29 }
 0x122   : > { %v914_v32 = vpop.f32.mrf.mxu2  ;;  %v881_v34 = vpop.f32.mrf.mxu0 }
 0x123   : > { %v863_v31 = vpop.f32.mrf.mxu3  ;;  %v915_v33 = vadd.f32 %v914_v32, %v897_v30  ;;  %v899_v35 = vpop.f32.mrf.mxu1 }
 0x124   : > { %v882_v36 = vadd.f32 %v881_v34, %v863_v31  ;;  %v951_v47 = vld [vmem:[%s1734_s29 + $0x8] sm:$0xff] (%p1425_p5) }
 0x125   : > { %924 = vst [vmem:[%s1734_s29 + $0x18] sm:$0xff] %v915_v33 }
 0x126   : > { %v900_v37 = vadd.f32 %v899_v35, %v882_v36  ;;  %952 = vst [vmem:[%s936_s3 + $0x8] sm:$0xff] (%p1425_p5), %v951_v47 }
 0x12a   : > { %v917_v39 = vpop.f32.mrf.mxu2  ;;  %v883_v41 = vpop.f32.mrf.mxu0 }
 0x12b   : > { %v865_v38 = vpop.f32.mrf.mxu3  ;;  %v918_v40 = vadd.f32 %v917_v39, %v900_v37  ;;  %v901_v43 = vpop.f32.mrf.mxu1 }
 0x12c   : > { %v955_v49 = vld [vmem:[%s1734_s29 + $0x18] sm:$0xff] (%p1425_p5) }
 0x12d   : > { %926 = vst [vmem:[%s1734_s29 + $0x28] sm:$0xff] %v918_v40 }
 0x12e   : > { %933 = sbr.rel (!%p1425_p5) target bundleno = 310 (0x136), region = 70  ;;  %956 = vst [vmem:[%s936_s3 + $0x28] sm:$0xff] (%p1425_p5), %v955_v49 }
 0x132   : > { %v919_v44 = vpop.f32.mrf.mxu2 }
 0x134   : > { %v959_v52 = vld [vmem:[%s1734_s29 + $0x28] sm:$0xff] }
 0x135   : > { %960 = vst [vmem:[%s936_s3 + $0x48] sm:$0xff] %v959_v52 }
 0x136 PF: > { %p9_p10 = scmp.ge.s32.totalorder %s1412_s13, 4   ;;  %s1769_s9 = smov %s1373_s10 }
 0x137   : > { %s1770_s10 = smov %s1423_s16  ;;  %s1771_s11 = smov %s1412_s13 }
 0x138   :  { %11 = sbr.rel (!%p9_p10) target bundleno = 2 (0x2), region = 124 }

// kernel: dbpnet_forward.11
= control target key start
LH: loop header
LB: loop body
LE: loop exit
PB: predicated region body
PF: predicated region fallthrough
CT: control target
= control target key end

     0   :  { %vm253_vm0 = vcmask 1040384   ;;  %v508_v11 = vmov 0   ;;  %vm246_vm1 = vcmask 7168   ;;  %s640_s0 = inlined_call_operand.vmem [shape: bf16[385,128], index: 0, kind: input, shape index: {}]   ;;  %s641_s1 = inlined_call_operand.vmem [shape: bf16[24,385], index: 1, kind: input, shape index: {}]   ;;  %s642_s2 = inlined_call_operand.vmem [shape: f32[24,128], index: 2, kind: output, shape index: {}]  }
   0x1   :  { %v484_v0 = vld [vmem:[%s640_s0 + $0x38] sm:$0xff]  ;;  %v483_v3 = vld [vmem:[%s640_s0 + $0x30] sm:$0xff]  ;;  %v482_v6 = vld [vmem:[%s640_s0 + $0x28] sm:$0xff]  ;;  %v255_v12 = vsel %vm253_vm0, 65535, %v508_v11 }
   0x2   :  { %v492_v1 = vld [vmem:[%s640_s0 + $0x78] sm:$0xff]  ;;  %259 = vmatpush.bf16.msra.mxu0 %v484_v0  ;;  %v491_v4 = vld [vmem:[%s640_s0 + $0x70] sm:$0xff]  ;;  %v490_v7 = vld [vmem:[%s640_s0 + $0x68] sm:$0xff] }
   0x3   :  { %v500_v2 = vld [vmem:[%s640_s0 + $0xb8] sm:$0xff]  ;;  %277 = vmatpush.bf16.msra.mxu1 %v492_v1  ;;  %v499_v5 = vld [vmem:[%s640_s0 + $0xb0] sm:$0xff]  ;;  %v66_v8 = vld [vmem:[%s640_s0 + $0xc0] sm:$0x1] }
   0x4   :  { %295 = vmatpush.bf16.msra.mxu2 %v500_v2  ;;  %v498_v9 = vld [vmem:[%s640_s0 + $0xa8] sm:$0xff]  ;;  %v196_v10 = vunpack.c.l.b16 %v66_v8  ;;  %v368_v15 = vld [vmem:[%s641_s1 + $0x18] sm:$0xf0]  ;;  %v481_v16 = vld [vmem:[%s640_s0 + $0x20] sm:$0xff] }
   0x5   :  { %v474_v14 = vld [vmem:[%s641_s1 + $0xc] sm:$0xf]  ;;  %v489_v17 = vld [vmem:[%s640_s0 + $0x60] sm:$0xff]  ;;  %v480_v21 = vld [vmem:[%s640_s0 + $0x18] sm:$0xff] }
   0x6   :  { %260 = vmatpush.bf16.msra.mxu0 %v483_v3  ;;  %v221_v13 = vpack.c.b16 %v196_v10, %v196_v10  ;;  %v497_v18 = vld [vmem:[%s640_s0 + $0xa0] sm:$0xff]  ;;  %v371_v20 = vor.u32 %v474_v14, %v368_v15  ;;  %v488_v22 = vld [vmem:[%s640_s0 + $0x58] sm:$0xff]  ;;  %v479_v24 = vld [vmem:[%s640_s0 + $0x10] sm:$0xff] }
   0x7   :  { %278 = vmatpush.bf16.msra.mxu1 %v491_v4  ;;  %v496_v23 = vld [vmem:[%s640_s0 + $0x98] sm:$0xff]  ;;  %v487_v25 = vld [vmem:[%s640_s0 + $0x50] sm:$0xff]  ;;  %v17_v27 = vld [vmem:[%s641_s1 + $0x28] sm:$0xff] }
   0x8   :  { %296 = vmatpush.bf16.msra.mxu2 %v499_v5  ;;  %v257_v19 = vand.u32 %v255_v12, %v221_v13  ;;  %v495_v26 = vld [vmem:[%s640_s0 + $0x90] sm:$0xff]  ;;  %v478_v28 = vld [vmem:[%s640_s0 + $0x8] sm:$0xff]  ;;  %v84_v31 = vunpack.c.h.b16 %v17_v27  ;;  %v477_v32 = vld [vmem:[%s640_s0] sm:$0xff]  ;;  %v83_v48 = vunpack.c.l.b16 %v17_v27 }
   0x9   :  { %v486_v29 = vld [vmem:[%s640_s0 + $0x48] sm:$0xff]  ;;  %v485_v33 = vld [vmem:[%s640_s0 + $0x40] sm:$0xff]  ;;  %v475_v35 = vld [vmem:[%s641_s1 + $0xc] sm:$0xf0] }
   0xa   :  { %261 = vmatpush.bf16.msra.mxu0 %v482_v6  ;;  %320 = vmatpush.bf16.msra.mxu3 %v257_v19  ;;  %v494_v30 = vld [vmem:[%s640_s0 + $0x88] sm:$0xff]  ;;  %v358_v34 = vld [vmem:[%s641_s1] sm:$0xf]  ;;  %v473_v36 = vld [vmem:[%s641_s1 + $0x4] sm:$0xf]  ;;  %v92_v41 = vpack.c.b16 %v84_v31, %v84_v31  ;;  %v91_v51 = vpack.c.b16 %v83_v48, %v83_v48 }
   0xb   :  { %279 = vmatpush.bf16.msra.mxu1 %v490_v7  ;;  %v360_v37 = vld [vmem:[%s641_s1 + $0x10] sm:$0xf0]  ;;  %v493_v38 = vld [vmem:[%s640_s0 + $0x80] sm:$0xff]  ;;  %v366_v39 = vld [vmem:[%s641_s1 + $0x8] sm:$0xf]  ;;  %v359_v42 = vor.u32 %v475_v35, %v358_v34 }
   0xc   :  { %297 = vmatpush.bf16.msra.mxu2 %v498_v9  ;;  %v476_v40 = vld [vmem:[%s641_s1 + $0x14] sm:$0xf0]  ;;  %v363_v43 = vor.u32 %v473_v36, %v360_v37  ;;  %v16_v45 = vld [vmem:[%s641_s1 + $0x20] sm:$0xff] }
   0xd   :  { %468 = vmatmul.msk.bf16.vlgmr.msra.gmra.mxu3 %vm246_vm1, %v371_v20  ;;  %v367_v44 = vor.u32 %v476_v40, %v366_v39  ;;  %v81_v46 = vunpack.c.l.b16 %v16_v45  ;;  %v82_v47 = vunpack.c.h.b16 %v16_v45 }
   0xe   :  { %262 = vmatpush.bf16.msra.mxu0 %v481_v16 }
   0xf   :  { %280 = vmatpush.bf16.msra.mxu1 %v489_v17  ;;  %v89_v49 = vpack.c.b16 %v81_v46, %v81_v46  ;;  %v90_v50 = vpack.c.b16 %v82_v47, %v82_v47 }
  0x10   :  { %298 = vmatpush.bf16.msra.mxu2 %v497_v18 }
  0x12   :  { %263 = vmatpush.bf16.msra.mxu0 %v480_v21 }
  0x13   :  { %281 = vmatpush.bf16.msra.mxu1 %v488_v22 }
  0x14   :  { %299 = vmatpush.bf16.msra.mxu2 %v496_v23 }
  0x16   :  { %264 = vmatpush.bf16.msra.mxu0 %v479_v24 }
  0x17   :  { %282 = vmatpush.bf16.msra.mxu1 %v487_v25 }
  0x18   :  { %300 = vmatpush.bf16.msra.mxu2 %v495_v26 }
  0x1a   :  { %265 = vmatpush.bf16.msra.mxu0 %v478_v28 }
  0x1b   :  { %283 = vmatpush.bf16.msra.mxu1 %v486_v29 }
  0x1c   :  { %301 = vmatpush.bf16.msra.mxu2 %v494_v30 }
  0x1d   :  { %469 = vmatmul.msk.bf16.gmra.mxu3 %vm246_vm1, %v92_v41 }
  0x1e   :  { %266 = vmatpush.bf16.msra.mxu0 %v477_v32 }
  0x1f   :  { %284 = vmatpush.bf16.msra.mxu1 %v485_v33 }
  0x20   :  { %302 = vmatpush.bf16.msra.mxu2 %v493_v38 }
  0x21   :  { %267 = vmatmul.bf16.vlgmr.msra.gmra.mxu0 %v359_v42 }
  0x22   :  { %285 = vmatmul.bf16.vlgmr.msra.gmra.mxu1 %v363_v43 }
  0x23   :  { %303 = vmatmul.bf16.vlgmr.msra.gmra.mxu2 %v367_v44 }
  0x31   :  { %272 = vmatmul.bf16.gmra.mxu0 %v89_v49 }
  0x32   :  { %290 = vmatmul.bf16.gmra.mxu1 %v90_v50 }
  0x33   :  { %308 = vmatmul.bf16.gmra.mxu2 %v91_v51 }
  0x90   :  { %v322_v52 = vpop.f32.mrf.mxu3 }
  0x98   :  { %v324_v53 = vpop.f32.mrf.mxu3 }
  0x9e   :  { %v268_v54 = vpop.f32.mrf.mxu0 }
  0x9f   :  { %v286_v55 = vpop.f32.mrf.mxu1 }
  0xa0   :  { %v287_v56 = vadd.f32 %v286_v55, %v268_v54  ;;  %v327_v57 = vpop.f32.mrf.mxu3 }
  0xa6   :  { %v304_v58 = vpop.f32.mrf.mxu2  ;;  %v270_v60 = vpop.f32.mrf.mxu0 }
  0xa7   :  { %v305_v59 = vadd.f32 %v304_v58, %v287_v56  ;;  %v288_v61 = vpop.f32.mrf.mxu1 }
  0xa8   :  { %v329_v0 = vpop.f32.mrf.mxu3  ;;  %v289_v2 = vadd.f32 %v288_v61, %v270_v60 }
  0xa9   :  { %v323_v62 = vadd.f32 %v322_v52, %v305_v59 }
  0xab   :  { %v334_v63 = vmin.f32 %v323_v62, 0.0  ;;  %vm331_vm2 = vcmp.gt.f32.partialorder %v323_v62, 0.0 }
  0xad   :  { %v337_v1 = vmul.f32 1.442695, %v334_v63 }
  0xae   :  { %v306_v3 = vpop.f32.mrf.mxu2  ;;  %v273_v5 = vpop.f32.mrf.mxu0 }
  0xaf   :  { %502 = vpow2.f32 %v337_v1  ;;  %v307_v4 = vadd.f32 %v306_v3, %v289_v2  ;;  %v291_v6 = vpop.f32.mrf.mxu1 }
  0xb0   :  { %v292_v9 = vadd.f32 %v291_v6, %v273_v5 }
  0xb1   :  { %v325_v7 = vadd.f32 %v324_v53, %v307_v4 }
  0xb3   :  { %v335_v8 = vmin.f32 %v325_v7, 0.0  ;;  %vm332_vm3 = vcmp.gt.f32.partialorder %v325_v7, 0.0 }
  0xb5   :  { %v503_v10 = vpop.eup %502  ;;  %v339_v11 = vmul.f32 1.442695, %v335_v8 }
  0xb6   :  { %v470_v12 = vadd.f32 -1.0, %v503_v10  ;;  %v309_v13 = vpop.f32.mrf.mxu2  ;;  %v275_v15 = vpop.f32.mrf.mxu0 }
  0xb7   :  { %504 = vpow2.f32 %v339_v11  ;;  %v310_v14 = vadd.f32 %v309_v13, %v292_v9  ;;  %v293_v16 = vpop.f32.mrf.mxu1 }
  0xb8   :  { %v346_v17 = vsel %vm331_vm2, %v323_v62, %v470_v12 }
  0xb9   :  { %349 = vst [vmem:[%s642_s2] sm:$0xff] %v346_v17  ;;  %v328_v18 = vadd.f32 %v327_v57, %v310_v14 }
  0xbb   :  { %v336_v19 = vmin.f32 %v328_v18, 0.0  ;;  %vm333_vm4 = vcmp.gt.f32.partialorder %v328_v18, 0.0 }
  0xbd   :  { %v505_v20 = vpop.eup %504  ;;  %v341_v21 = vmul.f32 1.442695, %v336_v19 }
  0xbe   :  { %v471_v22 = vadd.f32 -1.0, %v505_v20  ;;  %v311_v23 = vpop.f32.mrf.mxu2 }
  0xbf   :  { %506 = vpow2.f32 %v341_v21 }
  0xc0   :  { %v347_v24 = vsel %vm332_vm3, %v325_v7, %v471_v22 }
  0xc1   :  { %350 = vst [vmem:[%s642_s2 + $0x8] sm:$0xff] %v347_v24 }
  0xc5   :  { %v507_v25 = vpop.eup %506 }
  0xc6   :  { %v472_v26 = vadd.f32 -1.0, %v507_v25 }
  0xc8   :  { %v348_v27 = vsel %vm333_vm4, %v328_v18, %v472_v26 }
  0xc9   :  { %351 = vst [vmem:[%s642_s2 + $0x10] sm:$0xff] %v348_v27 }

// kernel: tile.3
= control target key start
LH: loop header
LB: loop body
LE: loop exit
PB: predicated region body
PF: predicated region fallthrough
CT: control target
= control target key end

     0   :  { %s358_s8 = smov 127   ;;  %s359_s9 = smov 123   ;;  %vm18_vm0 = vcmask 7168   ;;  %s458_s0 = inlined_call_operand.vmem [shape: bf16[4,24], index: 0, kind: input, shape index: {}]   ;;  %s459_s1 = inlined_call_operand.vmem [shape: bf16[96,1], index: 1, kind: output, shape index: {}]  }
   0x1   :  { %v13_v0 = vld [vmem:[%s458_s0] sm:$0x3]  ;;  %s357_s0 = smov 125   ;;  %s360_s10 = smov 124  }
   0x2   :  { %v14_v1 = vunpack.c.l.bf16 %v13_v0  ;;  %s361_s11 = smov 126   ;;  %s362_s12 = smov 122  }
   0x3   :  { %s363_s13 = smov 120   ;;  %s364_s14 = smov 121  }
   0x4   :  { %16 = vst [vmem:[#allocation1] sm:$0xf] %v14_v1  ;;  %s365_s15 = smov 119   ;;  %s366_s16 = smov 117  }
   0x5   :  { %s367_s17 = smov 118   ;;  %s368_s18 = smov 116  }
   0x6   :  { %s369_s19 = smov 114   ;;  %s370_s20 = smov 115  }
   0x7   :  { %s371_s21 = smov 113   ;;  %s372_s22 = smov 111  }
   0x8   :  { %s373_s23 = smov 112   ;;  %s374_s24 = smov 110  }
   0x9   :  { %s375_s25 = smov 108   ;;  %s376_s26 = smov 109  }
   0xa   :  { %s377_s27 = smov 107   ;;  %s378_s28 = smov 105  }
   0xb   :  { %v36_v2 = vld.sshfl [vmem:[#allocation1] sm:$0xff pattern:$0x11111230]   ;;  %s379_s29 = smov 106  }
   0xc   :  { %37 = vrot.lane.b32.xlu1 %v36_v2, %s357_s0  ;;  %21 = vrot.lane.b32.xlu0 %v36_v2, %s358_s8  ;;  %v76_v3 = vld.sshfl [vmem:[#allocation1] sm:$0xff pattern:$0x22222301]  }
   0xd   :  { %53 = vrot.lane.b32.xlu2 %v36_v2, %s359_s9  ;;  %v148_v4 = vld.sshfl [vmem:[#allocation1] sm:$0xff pattern:$0x33333012]  }
   0xe   :  { %v17_v6 = vld [vmem:[#allocation1] sm:$0xf]  }
   0xf   :  { %19 = vst.msk [vmem:[#allocation0] ss:$24 sm:$0xf] %vm18_vm0, %v17_v6  }
  0x14   :  { %45 = vrot.lane.b32.xlu1 %v36_v2, %s360_s10  ;;  %29 = vrot.lane.b32.xlu0 %v36_v2, %s361_s11 }
  0x15   :  { %61 = vrot.lane.b32.xlu2 %v36_v2, %s362_s12 }
  0x1c   :  { %77 = vrot.lane.b32.xlu1 %v76_v3, %s363_s13  ;;  %69 = vrot.lane.b32.xlu0 %v36_v2, %s364_s14 }
  0x1d   :  { %85 = vrot.lane.b32.xlu2 %v76_v3, %s365_s15 }
  0x24   :  { %101 = vrot.lane.b32.xlu1 %v76_v3, %s366_s16  ;;  %93 = vrot.lane.b32.xlu0 %v76_v3, %s367_s17 }
  0x25   :  { %109 = vrot.lane.b32.xlu2 %v76_v3, %s368_s18 }
  0x2c   :  { %125 = vrot.lane.b32.xlu1 %v76_v3, %s369_s19  ;;  %117 = vrot.lane.b32.xlu0 %v76_v3, %s370_s20 }
  0x2d   :  { %133 = vrot.lane.b32.xlu2 %v76_v3, %s371_s21 }
  0x34   :  { %149 = vrot.lane.b32.xlu1 %v148_v4, %s372_s22  ;;  %141 = vrot.lane.b32.xlu0 %v148_v4, %s373_s23 }
  0x35   :  { %157 = vrot.lane.b32.xlu2 %v148_v4, %s374_s24 }
  0x3c   :  { %173 = vrot.lane.b32.xlu1 %v148_v4, %s375_s25  ;;  %165 = vrot.lane.b32.xlu0 %v148_v4, %s376_s26 }
  0x3d   :  { %181 = vrot.lane.b32.xlu2 %v148_v4, %s377_s27 }
  0x44   :  { %197 = vrot.lane.b32.xlu1 %v148_v4, %s378_s28  ;;  %189 = vrot.lane.b32.xlu0 %v148_v4, %s379_s29 }
  0x67   :  { %v54_v5 = vpop.permute.xlu2 %53  }
  0x68   :  { %57 = vst.msk [vmem:[#allocation0 + $0x5] ss:$72 sm:$0x3] %vm18_vm0, %v54_v5  }
  0x69   :  { %59 = vst.msk [vmem:[#allocation0 + $0x65] ss:$-24 sm:$0xc] %vm18_vm0, %v54_v5  }
  0x6f   :  { %v62_v7 = vpop.permute.xlu2 %61  }
  0x70   :  { %65 = vst.msk [vmem:[#allocation0 + $0x6] ss:$72 sm:$0x3] %vm18_vm0, %v62_v7  }
  0x71   :  { %67 = vst.msk [vmem:[#allocation0 + $0x66] ss:$-24 sm:$0xc] %vm18_vm0, %v62_v7  }
  0x77   :  { %v86_v8 = vpop.permute.xlu2 %85  }
  0x78   :  { %89 = vst.msk [vmem:[#allocation0 + $0x21] ss:$-24 sm:$0x3] %vm18_vm0, %v86_v8  }
  0x79   :  { %91 = vst.msk [vmem:[#allocation0 + $0x81] ss:$-24 sm:$0xc] %vm18_vm0, %v86_v8  }
  0x7e   :  { %v38_v9 = vpop.permute.xlu1 %37   ;;  %v22_v10 = vpop.permute.xlu0 %21  }
  0x7f   :  { %41 = vst.msk [vmem:[#allocation0 + $0x3] ss:$72 sm:$0x3] %vm18_vm0, %v38_v9   ;;  %v110_v11 = vpop.permute.xlu2 %109  }
  0x80   :  { %43 = vst.msk [vmem:[#allocation0 + $0x63] ss:$-24 sm:$0xc] %vm18_vm0, %v38_v9  }
  0x81   :  { %25 = vst.msk [vmem:[#allocation0 + $0x1] ss:$72 sm:$0x3] %vm18_vm0, %v22_v10  }
  0x82   :  { %27 = vst.msk [vmem:[#allocation0 + $0x61] ss:$-24 sm:$0xc] %vm18_vm0, %v22_v10  }
  0x83   :  { %113 = vst.msk [vmem:[#allocation0 + $0x24] ss:$-24 sm:$0x3] %vm18_vm0, %v110_v11  }
  0x84   :  { %115 = vst.msk [vmem:[#allocation0 + $0x84] ss:$-24 sm:$0xc] %vm18_vm0, %v110_v11  }
  0x86   :  { %v46_v12 = vpop.permute.xlu1 %45   ;;  %v30_v13 = vpop.permute.xlu0 %29  }
  0x87   :  { %49 = vst.msk [vmem:[#allocation0 + $0x4] ss:$72 sm:$0x3] %vm18_vm0, %v46_v12   ;;  %v134_v14 = vpop.permute.xlu2 %133  }
  0x88   :  { %51 = vst.msk [vmem:[#allocation0 + $0x64] ss:$-24 sm:$0xc] %vm18_vm0, %v46_v12  }
  0x89   :  { %33 = vst.msk [vmem:[#allocation0 + $0x2] ss:$72 sm:$0x3] %vm18_vm0, %v30_v13  }
  0x8a   :  { %35 = vst.msk [vmem:[#allocation0 + $0x62] ss:$-24 sm:$0xc] %vm18_vm0, %v30_v13  }
  0x8b   :  { %137 = vst.msk [vmem:[#allocation0 + $0x27] ss:$-24 sm:$0x3] %vm18_vm0, %v134_v14  }
  0x8c   :  { %139 = vst.msk [vmem:[#allocation0 + $0x87] ss:$-24 sm:$0xc] %vm18_vm0, %v134_v14  }
  0x8e   :  { %v78_v15 = vpop.permute.xlu1 %77   ;;  %v70_v16 = vpop.permute.xlu0 %69  }
  0x8f   :  { %81 = vst.msk [vmem:[#allocation0 + $0x20] ss:$-24 sm:$0x3] %vm18_vm0, %v78_v15   ;;  %v158_v17 = vpop.permute.xlu2 %157  }
  0x90   :  { %83 = vst.msk [vmem:[#allocation0 + $0x80] ss:$-24 sm:$0xc] %vm18_vm0, %v78_v15  }
  0x91   :  { %73 = vst.msk [vmem:[#allocation0 + $0x7] ss:$72 sm:$0x3] %vm18_vm0, %v70_v16  }
  0x92   :  { %75 = vst.msk [vmem:[#allocation0 + $0x67] ss:$-24 sm:$0xc] %vm18_vm0, %v70_v16  }
  0x93   :  { %161 = vst.msk [vmem:[#allocation0 + $0x42] ss:$-24 sm:$0x7] %vm18_vm0, %v158_v17  }
  0x94   :  { %163 = vst.msk [vmem:[#allocation0 + $0x57] sm:$0x8] %vm18_vm0, %v158_v17  }
  0x96   :  { %v102_v18 = vpop.permute.xlu1 %101   ;;  %v94_v19 = vpop.permute.xlu0 %93  }
  0x97   :  { %105 = vst.msk [vmem:[#allocation0 + $0x23] ss:$-24 sm:$0x3] %vm18_vm0, %v102_v18   ;;  %v182_v20 = vpop.permute.xlu2 %181  }
  0x98   :  { %107 = vst.msk [vmem:[#allocation0 + $0x83] ss:$-24 sm:$0xc] %vm18_vm0, %v102_v18   ;;  %v206_v25 = vld [vmem:[#allocation0] sm:$0xff]  ;;  %v268_v36 = vld [vmem:[#allocation0 + $0x48] sm:$0xff] }
  0x99   :  { %97 = vst.msk [vmem:[#allocation0 + $0x22] ss:$-24 sm:$0x3] %vm18_vm0, %v94_v19   ;;  %v247_v27 = vld [vmem:[#allocation0 + $0x30] sm:$0xff]  ;;  %v226_v35 = vld [vmem:[#allocation0 + $0x18] sm:$0xff] }
  0x9a   :  { %99 = vst.msk [vmem:[#allocation0 + $0x82] ss:$-24 sm:$0xc] %vm18_vm0, %v94_v19  }
  0x9b   :  { %185 = vst.msk [vmem:[#allocation0 + $0x45] ss:$-24 sm:$0x7] %vm18_vm0, %v182_v20  }
  0x9c   :  { %187 = vst.msk [vmem:[#allocation0 + $0x5a] sm:$0x8] %vm18_vm0, %v182_v20  }
  0x9e   :  { %v126_v21 = vpop.permute.xlu1 %125   ;;  %v118_v22 = vpop.permute.xlu0 %117  }
  0x9f   :  { %129 = vst.msk [vmem:[#allocation0 + $0x26] ss:$-24 sm:$0x3] %vm18_vm0, %v126_v21  }
  0xa0   :  { %131 = vst.msk [vmem:[#allocation0 + $0x86] ss:$-24 sm:$0xc] %vm18_vm0, %v126_v21  }
  0xa1   :  { %121 = vst.msk [vmem:[#allocation0 + $0x25] ss:$-24 sm:$0x3] %vm18_vm0, %v118_v22  }
  0xa2   :  { %123 = vst.msk [vmem:[#allocation0 + $0x85] ss:$-24 sm:$0xc] %vm18_vm0, %v118_v22  }
  0xa6   :  { %v150_v23 = vpop.permute.xlu1 %149   ;;  %v142_v24 = vpop.permute.xlu0 %141  }
  0xa7   :  { %153 = vst.msk [vmem:[#allocation0 + $0x41] ss:$-24 sm:$0x7] %vm18_vm0, %v150_v23  }
  0xa8   :  { %v212_v26 = vld [vmem:[#allocation0 + $0x8] sm:$0xff]  ;;  %155 = vst.msk [vmem:[#allocation0 + $0x56] sm:$0x8] %vm18_vm0, %v150_v23   ;;  %v233_v37 = vld [vmem:[#allocation0 + $0x20] sm:$0xff] }
  0xa9   :  { %v254_v28 = vld [vmem:[#allocation0 + $0x38] sm:$0xff]  ;;  %v302_v29 = vpack.c.bf16 %v212_v26, %v206_v25  ;;  %145 = vst.msk [vmem:[#allocation0 + $0x40] ss:$-24 sm:$0x7] %vm18_vm0, %v142_v24   ;;  %v275_v41 = vld [vmem:[#allocation0 + $0x50] sm:$0xff] }
  0xaa   :  { %v317_v30 = vpack.c.bf16 %v254_v28, %v247_v27  ;;  %147 = vst.msk [vmem:[#allocation0 + $0x55] sm:$0x8] %vm18_vm0, %v142_v24  }
  0xab   :  { %303 = vst [vmem:[%s459_s1] sm:$0xff] %v302_v29  }
  0xac   :  { %331 = vst [vmem:[%s459_s1 + $0x18] sm:$0xff] %v317_v30  }
  0xae   :  { %v174_v31 = vpop.permute.xlu1 %173   ;;  %v166_v32 = vpop.permute.xlu0 %165  }
  0xaf   :  { %177 = vst.msk [vmem:[#allocation0 + $0x44] ss:$-24 sm:$0x7] %vm18_vm0, %v174_v31  }
  0xb0   :  { %179 = vst.msk [vmem:[#allocation0 + $0x59] sm:$0x8] %vm18_vm0, %v174_v31  }
  0xb1   :  { %169 = vst.msk [vmem:[#allocation0 + $0x43] ss:$-24 sm:$0x7] %vm18_vm0, %v166_v32  }
  0xb2   :  { %171 = vst.msk [vmem:[#allocation0 + $0x58] sm:$0x8] %vm18_vm0, %v166_v32  }
  0xb6   :  { %v198_v33 = vpop.permute.xlu1 %197   ;;  %v190_v34 = vpop.permute.xlu0 %189  }
  0xb7   :  { %201 = vst.msk [vmem:[#allocation0 + $0x47] ss:$-24 sm:$0x7] %vm18_vm0, %v198_v33  }
  0xb8   :  { %203 = vst.msk [vmem:[#allocation0 + $0x5c] sm:$0x8] %vm18_vm0, %v198_v33  }
  0xb9   :  { %193 = vst.msk [vmem:[#allocation0 + $0x46] ss:$-24 sm:$0x7] %vm18_vm0, %v190_v34  }
  0xba   :  { %195 = vst.msk [vmem:[#allocation0 + $0x5b] sm:$0x8] %vm18_vm0, %v190_v34  }
  0xc0   :  { %v219_v38 = vld [vmem:[#allocation0 + $0x10] sm:$0xff]  ;;  %v240_v39 = vld [vmem:[#allocation0 + $0x28] sm:$0xff]  ;;  %v261_v40 = vld [vmem:[#allocation0 + $0x40] sm:$0xff] }
  0xc1   :  { %v307_v42 = vpack.c.bf16 %v226_v35, %v219_v38  ;;  %v312_v43 = vpack.c.bf16 %v240_v39, %v233_v37  ;;  %v322_v44 = vpack.c.bf16 %v268_v36, %v261_v40  ;;  %v282_v45 = vld [vmem:[#allocation0 + $0x58] sm:$0xff] }
  0xc2   :  { %v327_v46 = vpack.c.bf16 %v282_v45, %v275_v41 }
  0xc3   :  { %329 = vst [vmem:[%s459_s1 + $0x8] sm:$0xff] %v307_v42  }
  0xc4   :  { %330 = vst [vmem:[%s459_s1 + $0x10] sm:$0xff] %v312_v43  }
  0xc5   :  { %332 = vst [vmem:[%s459_s1 + $0x20] sm:$0xff] %v322_v44  }
  0xc6   :  { %333 = vst [vmem:[%s459_s1 + $0x28] sm:$0xff] %v327_v46  }

// kernel: dbpnet_forward.12
= control target key start
LH: loop header
LB: loop body
LE: loop exit
PB: predicated region body
PF: predicated region fallthrough
CT: control target
= control target key end

     0   :  { %vm208_vm0 = vcmask 1043456   ;;  %vm209_vm1 = vcmask 1044480   ;;  %v568_v3 = vmov 65535   ;;  %vm189_vm2 = vcmask 728064   ;;  %s749_s0 = inlined_call_operand.vmem [shape: bf16[217,128], index: 0, kind: input, shape index: {}]   ;;  %s750_s1 = inlined_call_operand.vmem [shape: bf16[96,217], index: 1, kind: input, shape index: {}]   ;;  %s751_s2 = inlined_call_operand.vmem [shape: f32[96,128], index: 2, kind: output, shape index: {}]  }
   0x1   :  { %v522_v0 = vld [vmem:[%s749_s0 + $0x38] sm:$0xff]  ;;  %v483_v1 = vld [vmem:[%s749_s0 + $0x68] sm:$0xf]  ;;  %v528_v2 = vld [vmem:[%s749_s0 + $0x68] sm:$0x10]  ;;  %v210_v4 = vsel %vm208_vm0, 4294967295, %v568_v3 }
   0x2   :  { %v484_v5 = vor.u32 %v528_v2, %v483_v1  ;;  %v211_v6 = vsel %vm209_vm1, %v210_v4, 0  ;;  %215 = vmatpush.bf16.msra.mxu0 %v522_v0  ;;  %529 = vmatpush.bf16.msra.mxu2 %v522_v0  ;;  %v521_v7 = vld [vmem:[%s749_s0 + $0x30] sm:$0xff]  ;;  %v527_v9 = vld [vmem:[%s749_s0 + $0x60] sm:$0xff]  ;;  %v520_v10 = vld [vmem:[%s749_s0 + $0x28] sm:$0xff] }
   0x3   :  { %v526_v11 = vld [vmem:[%s749_s0 + $0x58] sm:$0xff]  ;;  %v519_v12 = vld [vmem:[%s749_s0 + $0x20] sm:$0xff]  ;;  %v525_v13 = vld [vmem:[%s749_s0 + $0x50] sm:$0xff] }
   0x4   :  { %v213_v8 = vand.u32 %v484_v5, %v211_v6  ;;  %v518_v14 = vld [vmem:[%s749_s0 + $0x18] sm:$0xff]  ;;  %v524_v15 = vld [vmem:[%s749_s0 + $0x48] sm:$0xff]  ;;  %v517_v16 = vld [vmem:[%s749_s0 + $0x10] sm:$0xff] }
   0x5   :  { %v523_v17 = vld [vmem:[%s749_s0 + $0x40] sm:$0xff]  ;;  %v385_v19 = vld [vmem:[%s750_s1 + $0x8] sm:$0xf0]  ;;  %v504_v27 = vld [vmem:[%s750_s1 + $0x4] sm:$0xf0] }
   0x6   :  { %256 = vmatpush.bf16.msra.mxu1 %v213_v8  ;;  %537 = vmatpush.bf16.msra.mxu3 %v213_v8  ;;  %v503_v18 = vld [vmem:[%s750_s1 + $0x4] sm:$0xf]  ;;  %v417_v21 = vld [vmem:[%s750_s1 + $0x48] sm:$0xf0]  ;;  %v383_v26 = vld [vmem:[%s750_s1] sm:$0xf] }
   0x7   :  { %216 = vmatpush.bf16.msra.mxu0 %v521_v7  ;;  %530 = vmatpush.bf16.msra.mxu2 %v521_v7  ;;  %v511_v20 = vld [vmem:[%s750_s1 + $0x44] sm:$0xf]  ;;  %v516_v22 = vld [vmem:[%s749_s0 + $0x8] sm:$0xff]  ;;  %v388_v23 = vor.u32 %v503_v18, %v385_v19  ;;  %v407_v28 = vld [vmem:[%s750_s1 + $0x30] sm:$0xf]  ;;  %v384_v30 = vor.u32 %v504_v27, %v383_v26 }
   0x8   :  { %v420_v24 = vor.u32 %v511_v20, %v417_v21  ;;  %v515_v25 = vld [vmem:[%s749_s0] sm:$0xff]  ;;  %v510_v29 = vld [vmem:[%s750_s1 + $0x34] sm:$0xf0]  ;;  %v505_v32 = vld [vmem:[%s750_s1 + $0x14] sm:$0xf] }
   0x9   :  { %v408_v31 = vor.u32 %v510_v29, %v407_v28  ;;  %v393_v33 = vld [vmem:[%s750_s1 + $0x18] sm:$0xf0]  ;;  %v513_v34 = vld [vmem:[%s750_s1 + $0x54] sm:$0xf]  ;;  %v391_v38 = vld [vmem:[%s750_s1 + $0x10] sm:$0xf] }
   0xa   :  { %257 = vmatpush.bf16.msra.mxu1 %v527_v9  ;;  %538 = vmatpush.bf16.msra.mxu3 %v527_v9  ;;  %v425_v35 = vld [vmem:[%s750_s1 + $0x58] sm:$0xf0]  ;;  %v396_v36 = vor.u32 %v505_v32, %v393_v33  ;;  %v506_v39 = vld [vmem:[%s750_s1 + $0x14] sm:$0xf0]  ;;  %v415_v40 = vld [vmem:[%s750_s1 + $0x40] sm:$0xf] }
   0xb   :  { %217 = vmatpush.bf16.msra.mxu0 %v520_v10  ;;  %531 = vmatpush.bf16.msra.mxu2 %v520_v10  ;;  %v428_v37 = vor.u32 %v513_v34, %v425_v35  ;;  %v512_v41 = vld [vmem:[%s750_s1 + $0x44] sm:$0xf0]  ;;  %v392_v42 = vor.u32 %v506_v39, %v391_v38  ;;  %v507_v44 = vld [vmem:[%s750_s1 + $0x24] sm:$0xf]  ;;  %v401_v45 = vld [vmem:[%s750_s1 + $0x28] sm:$0xf0] }
   0xc   :  { %v416_v43 = vor.u32 %v512_v41, %v415_v40  ;;  %v404_v46 = vor.u32 %v507_v44, %v401_v45  ;;  %v399_v47 = vld [vmem:[%s750_s1 + $0x20] sm:$0xf]  ;;  %v508_v48 = vld [vmem:[%s750_s1 + $0x24] sm:$0xf0]  ;;  %v423_v49 = vld [vmem:[%s750_s1 + $0x50] sm:$0xf] }
   0xd   :  { %v514_v50 = vld [vmem:[%s750_s1 + $0x54] sm:$0xf0]  ;;  %v400_v51 = vor.u32 %v508_v48, %v399_v47  ;;  %v509_v53 = vld [vmem:[%s750_s1 + $0x34] sm:$0xf]  ;;  %v409_v54 = vld [vmem:[%s750_s1 + $0x38] sm:$0xf0] }
   0xe   :  { %258 = vmatpush.bf16.msra.mxu1 %v526_v11  ;;  %539 = vmatpush.bf16.msra.mxu3 %v526_v11  ;;  %v424_v52 = vor.u32 %v514_v50, %v423_v49  ;;  %v412_v55 = vor.u32 %v509_v53, %v409_v54 }
   0xf   :  { %218 = vmatpush.bf16.msra.mxu0 %v519_v12  ;;  %532 = vmatpush.bf16.msra.mxu2 %v519_v12 }
  0x12   :  { %259 = vmatpush.bf16.msra.mxu1 %v525_v13  ;;  %540 = vmatpush.bf16.msra.mxu3 %v525_v13 }
  0x13   :  { %219 = vmatpush.bf16.msra.mxu0 %v518_v14  ;;  %533 = vmatpush.bf16.msra.mxu2 %v518_v14 }
  0x16   :  { %260 = vmatpush.bf16.msra.mxu1 %v524_v15  ;;  %541 = vmatpush.bf16.msra.mxu3 %v524_v15 }
  0x17   :  { %220 = vmatpush.bf16.msra.mxu0 %v517_v16  ;;  %534 = vmatpush.bf16.msra.mxu2 %v517_v16 }
  0x1a   :  { %261 = vmatpush.bf16.msra.mxu1 %v523_v17  ;;  %542 = vmatpush.bf16.msra.mxu3 %v523_v17 }
  0x1b   :  { %221 = vmatpush.bf16.msra.mxu0 %v516_v22  ;;  %535 = vmatpush.bf16.msra.mxu2 %v516_v22 }
  0x1d   :  { %485 = vmatmul.msk.bf16.vlgmr.msra.gmra.mxu1 %vm189_vm2, %v388_v23  ;;  %489 = vmatmul.msk.bf16.vlgmr.msra.gmra.mxu3 %vm189_vm2, %v420_v24 }
  0x1f   :  { %222 = vmatpush.bf16.msra.mxu0 %v515_v25  ;;  %536 = vmatpush.bf16.msra.mxu2 %v515_v25 }
  0x22   :  { %223 = vmatmul.bf16.vlgmr.msra.gmra.mxu0 %v384_v30  ;;  %238 = vmatmul.bf16.vlgmr.msra.gmra.mxu2 %v408_v31 }
  0x2d   :  { %486 = vmatmul.msk.bf16.gmra.mxu1 %vm189_vm2, %v396_v36  ;;  %490 = vmatmul.msk.bf16.gmra.mxu3 %vm189_vm2, %v428_v37 }
  0x32   :  { %228 = vmatmul.bf16.gmra.mxu0 %v392_v42  ;;  %243 = vmatmul.bf16.gmra.mxu2 %v416_v43 }
  0x3d   :  { %487 = vmatmul.msk.bf16.gmra.mxu1 %vm189_vm2, %v404_v46 }
  0x42   :  { %233 = vmatmul.bf16.gmra.mxu0 %v400_v51  ;;  %248 = vmatmul.bf16.gmra.mxu2 %v424_v52 }
  0x4d   :  { %488 = vmatmul.msk.bf16.gmra.mxu1 %vm189_vm2, %v412_v55 }
  0x9a   :  { %v263_v56 = vpop.f32.mrf.mxu1 }
  0x9f   :  { %v224_v57 = vpop.f32.mrf.mxu0 }
  0xa0   :  { %v264_v58 = vadd.f32 %v263_v56, %v224_v57  ;;  %v283_v9 = vpop.f32.mrf.mxu3 }
  0xa2   :  { %v305_v59 = vmin.f32 %v264_v58, 0.0  ;;  %v265_v60 = vpop.f32.mrf.mxu1  ;;  %vm293_vm3 = vcmp.gt.f32.partialorder %v264_v58, 0.0 }
  0xa4   :  { %v317_v61 = vmul.f32 1.442695, %v305_v59 }
  0xa5   :  { %v707_v62 = vpop.f32.mrf.mxu2 }
  0xa6   :  { %544 = vpow2.f32 %v317_v61 }
  0xa7   :  { %v226_v63 = vpop.f32.mrf.mxu0 }
  0xa8   :  { %v266_v0 = vadd.f32 %v265_v60, %v226_v63  ;;  %v285_v22 = vpop.f32.mrf.mxu3 }
  0xaa   :  { %v306_v1 = vmin.f32 %v266_v0, 0.0  ;;  %v268_v2 = vpop.f32.mrf.mxu1  ;;  %vm294_vm4 = vcmp.gt.f32.partialorder %v266_v0, 0.0 }
  0xac   :  { %v545_v3 = vpop.eup %544  ;;  %v319_v4 = vmul.f32 1.442695, %v306_v1 }
  0xad   :  { %v491_v5 = vadd.f32 -1.0, %v545_v3  ;;  %v709_v6 = vpop.f32.mrf.mxu2 }
  0xae   :  { %546 = vpow2.f32 %v319_v4 }
  0xaf   :  { %v353_v7 = vsel %vm293_vm3, %v264_v58, %v491_v5  ;;  %v229_v8 = vpop.f32.mrf.mxu0 }
  0xb0   :  { %365 = vst [vmem:[%s751_s2] sm:$0xff] %v353_v7  ;;  %v269_v10 = vadd.f32 %v268_v2, %v229_v8  ;;  %v288_v40 = vpop.f32.mrf.mxu3 }
  0xb2   :  { %v307_v11 = vmin.f32 %v269_v10, 0.0  ;;  %v270_v12 = vpop.f32.mrf.mxu1  ;;  %vm295_vm5 = vcmp.gt.f32.partialorder %v269_v10, 0.0 }
  0xb4   :  { %v547_v13 = vpop.eup %546  ;;  %v321_v14 = vmul.f32 1.442695, %v307_v11 }
  0xb5   :  { %v492_v15 = vadd.f32 -1.0, %v547_v13  ;;  %v244_v16 = vpop.f32.mrf.mxu2 }
  0xb6   :  { %548 = vpow2.f32 %v321_v14  ;;  %v284_v17 = vadd.f32 %v283_v9, %v244_v16 }
  0xb7   :  { %v354_v18 = vsel %vm294_vm4, %v266_v0, %v492_v15  ;;  %v231_v19 = vpop.f32.mrf.mxu0 }
  0xb8   :  { %366 = vst [vmem:[%s751_s2 + $0x8] sm:$0xff] %v354_v18  ;;  %v313_v20 = vmin.f32 %v284_v17, 0.0  ;;  %v271_v21 = vadd.f32 %v270_v12, %v231_v19  ;;  %vm301_vm6 = vcmp.gt.f32.partialorder %v284_v17, 0.0  ;;  %v290_v63 = vpop.f32.mrf.mxu3 }
  0xba   :  { %v333_v23 = vmul.f32 1.442695, %v313_v20  ;;  %v308_v24 = vmin.f32 %v271_v21, 0.0  ;;  %v273_v25 = vpop.f32.mrf.mxu1  ;;  %vm296_vm7 = vcmp.gt.f32.partialorder %v271_v21, 0.0 }
  0xbc   :  { %v549_v26 = vpop.eup %548  ;;  %550 = vpow2.f32 %v333_v23  ;;  %v323_v27 = vmul.f32 1.442695, %v308_v24 }
  0xbd   :  { %v493_v28 = vadd.f32 -1.0, %v549_v26  ;;  %v246_v29 = vpop.f32.mrf.mxu2 }
  0xbe   :  { %552 = vpow2.f32 %v323_v27  ;;  %v286_v30 = vadd.f32 %v285_v22, %v246_v29 }
  0xbf   :  { %v355_v31 = vsel %vm295_vm5, %v269_v10, %v493_v28  ;;  %v234_v32 = vpop.f32.mrf.mxu0 }
  0xc0   :  { %367 = vst [vmem:[%s751_s2 + $0x10] sm:$0xff] %v355_v31  ;;  %v314_v33 = vmin.f32 %v286_v30, 0.0  ;;  %v274_v34 = vadd.f32 %v273_v25, %v234_v32  ;;  %vm302_vm8 = vcmp.gt.f32.partialorder %v286_v30, 0.0 }
  0xc2   :  { %v551_v35 = vpop.eup %550  ;;  %v335_v36 = vmul.f32 1.442695, %v314_v33  ;;  %v309_v37 = vmin.f32 %v274_v34, 0.0  ;;  %v275_v38 = vpop.f32.mrf.mxu1  ;;  %vm297_vm9 = vcmp.gt.f32.partialorder %v274_v34, 0.0 }
  0xc3   :  { %v499_v39 = vadd.f32 -1.0, %v551_v35 }
  0xc4   :  { %v553_v41 = vpop.eup %552  ;;  %554 = vpow2.f32 %v335_v36  ;;  %v325_v42 = vmul.f32 1.442695, %v309_v37 }
  0xc5   :  { %v361_v43 = vsel %vm301_vm6, %v284_v17, %v499_v39  ;;  %v494_v44 = vadd.f32 -1.0, %v553_v41  ;;  %v249_v45 = vpop.f32.mrf.mxu2 }
  0xc6   :  { %373 = vst [vmem:[%s751_s2 + $0x40] sm:$0xff] %v361_v43  ;;  %556 = vpow2.f32 %v325_v42  ;;  %v289_v46 = vadd.f32 %v288_v40, %v249_v45 }
  0xc7   :  { %v356_v47 = vsel %vm296_vm7, %v271_v21, %v494_v44  ;;  %v236_v48 = vpop.f32.mrf.mxu0 }
  0xc8   :  { %368 = vst [vmem:[%s751_s2 + $0x18] sm:$0xff] %v356_v47  ;;  %v315_v49 = vmin.f32 %v289_v46, 0.0  ;;  %v276_v50 = vadd.f32 %v275_v38, %v236_v48  ;;  %vm303_vm10 = vcmp.gt.f32.partialorder %v289_v46, 0.0 }
  0xca   :  { %v555_v51 = vpop.eup %554  ;;  %v337_v52 = vmul.f32 1.442695, %v315_v49  ;;  %v310_v53 = vmin.f32 %v276_v50, 0.0  ;;  %v278_v54 = vpop.f32.mrf.mxu1  ;;  %vm298_vm11 = vcmp.gt.f32.partialorder %v276_v50, 0.0 }
  0xcb   :  { %v500_v55 = vadd.f32 -1.0, %v555_v51  ;;  %v279_v56 = vadd.f32 %v278_v54, %v707_v62 }
  0xcc   :  { %v557_v57 = vpop.eup %556  ;;  %558 = vpow2.f32 %v337_v52  ;;  %v327_v58 = vmul.f32 1.442695, %v310_v53 }
  0xcd   :  { %v362_v59 = vsel %vm302_vm8, %v286_v30, %v500_v55  ;;  %v495_v60 = vadd.f32 -1.0, %v557_v57  ;;  %v311_v61 = vmin.f32 %v279_v56, 0.0  ;;  %v251_v0 = vpop.f32.mrf.mxu2  ;;  %vm299_vm12 = vcmp.gt.f32.partialorder %v279_v56, 0.0 }
  0xce   :  { %374 = vst [vmem:[%s751_s2 + $0x48] sm:$0xff] %v362_v59  ;;  %560 = vpow2.f32 %v327_v58  ;;  %v291_v1 = vadd.f32 %v290_v63, %v251_v0 }
  0xcf   :  { %v357_v2 = vsel %vm297_vm9, %v274_v34, %v495_v60  ;;  %v329_v3 = vmul.f32 1.442695, %v311_v61 }
  0xd0   :  { %369 = vst [vmem:[%s751_s2 + $0x20] sm:$0xff] %v357_v2  ;;  %v316_v62 = vmin.f32 %v291_v1, 0.0  ;;  %vm304_vm13 = vcmp.gt.f32.partialorder %v291_v1, 0.0 }
  0xd1   :  { %562 = vpow2.f32 %v329_v3 }
  0xd2   :  { %v559_v4 = vpop.eup %558  ;;  %v339_v5 = vmul.f32 1.442695, %v316_v62  ;;  %v280_v7 = vpop.f32.mrf.mxu1 }
  0xd3   :  { %v501_v8 = vadd.f32 -1.0, %v559_v4  ;;  %v281_v9 = vadd.f32 %v280_v7, %v709_v6 }
  0xd4   :  { %v561_v10 = vpop.eup %560  ;;  %564 = vpow2.f32 %v339_v5 }
  0xd5   :  { %v363_v11 = vsel %vm303_vm10, %v289_v46, %v501_v8  ;;  %v496_v12 = vadd.f32 -1.0, %v561_v10  ;;  %v312_v13 = vmin.f32 %v281_v9, 0.0  ;;  %vm300_vm14 = vcmp.gt.f32.partialorder %v281_v9, 0.0 }
  0xd6   :  { %375 = vst [vmem:[%s751_s2 + $0x50] sm:$0xff] %v363_v11 }
  0xd7   :  { %v563_v14 = vpop.eup %562  ;;  %v358_v15 = vsel %vm298_vm11, %v276_v50, %v496_v12  ;;  %v331_v16 = vmul.f32 1.442695, %v312_v13 }
  0xd8   :  { %370 = vst [vmem:[%s751_s2 + $0x28] sm:$0xff] %v358_v15  ;;  %v497_v17 = vadd.f32 -1.0, %v563_v14 }
  0xd9   :  { %566 = vpow2.f32 %v331_v16 }
  0xda   :  { %v565_v6 = vpop.eup %564  ;;  %v359_v18 = vsel %vm299_vm12, %v279_v56, %v497_v17 }
  0xdb   :  { %371 = vst [vmem:[%s751_s2 + $0x30] sm:$0xff] %v359_v18  ;;  %v502_v19 = vadd.f32 -1.0, %v565_v6 }
  0xdd   :  { %v364_v20 = vsel %vm304_vm13, %v291_v1, %v502_v19 }
  0xde   :  { %376 = vst [vmem:[%s751_s2 + $0x58] sm:$0xff] %v364_v20 }
  0xdf   :  { %v567_v21 = vpop.eup %566 }
  0xe0   :  { %v498_v22 = vadd.f32 -1.0, %v567_v21 }
  0xe2   :  { %v360_v23 = vsel %vm300_vm14, %v281_v9, %v498_v22 }
  0xe3   :  { %372 = vst [vmem:[%s751_s2 + $0x38] sm:$0xff] %v360_v23 }

// kernel: dbpnet_forward.17
= control target key start
LH: loop header
LB: loop body
LE: loop exit
PB: predicated region body
PF: predicated region fallthrough
CT: control target
= control target key end

     0   :  { %s427_s9 = smov 0   ;;  %s429_s10 = smov 0   ;;  %s484_s0 = inlined_call_operand.vmem [shape: bf16[25,512], index: 0, kind: input, shape index: {}]   ;;  %s485_s1 = inlined_call_operand.vmem [shape: bf16[3,25], index: 1, kind: input, shape index: {}]   ;;  %s486_s2 = inlined_call_operand.vmem [shape: f32[3,512], index: 2, kind: output, shape index: {}]  }
   0x1   :  { %s431_s11 = smov 0  }
   0x2 LB: > { %s326_s12 = sadd.s32 4294967295, %s409_s11   ;;  %s444_s13 = sadd.s32 1, %s409_s11   ;;  %s409_s11 = sphi %s431_s11, %s489_s11   ;;  %s405_s10 = sphi %s429_s10, %s488_s10   ;;  %s401_s9 = sphi %s427_s9, %s487_s9  }
   0x3   : > { %s16_s14 = ssub.s32 %s409_s11, %s444_s13  ;;  %s19_s15 = sadd.s32 1, %s405_s10 }
   0x4   : > { %p17_p0 = scmp.eq.s32.totalorder %s16_s14, 0  ;;  %p26_p1 = scmp.ne.s32.totalorder %s405_s10, %s401_s9 }
   0x5   : > { %p27_p2 = scmp.eq.s32.totalorder %s409_s11, 0  ;;  %p329_p4 = scmp.ge.s32.totalorder %s409_s11, 2 }
   0x6   : > { %s453_s16 = scalar_select %p17_p0, %s405_s10, %s19_s15  }
   0x7   : > { %p28_p3 = por %p27_p2, %p26_p1  ;;  %102 = sbr.rel (%p329_p4) target bundleno = 20 (0x14), region = 20 }
   0xc   : > { %105 = sbr.rel (!%p28_p3) target bundleno = 20 (0x14), region = 24  ;;  %s107_s17 = sand.u32 (%p28_p3), 1, %s405_s10  }
   0xd   : > { %s357_s18 = sshll.u32 (%p28_p3), %s409_s11, 3  ;;  %s330_s19 = sshll.u32 (%p28_p3), %s107_s17, 5 }
   0xe   : > { %s112_s22 = scalar_lea.vmem (%p28_p3), %s484_s0, %s357_s18  ;;  %s109_s23 = scalar_lea.vmem (%p28_p3), [#allocation2], %s330_s19 }
   0xf   : > { %v147_v0 = vld [vmem:[%s112_s22] sm:$0xff] (%p28_p3)  ;;  %v149_v1 = vld [vmem:[%s112_s22 + $0x10] sm:$0xff] (%p28_p3) }
  0x10   : > { %v151_v2 = vld [vmem:[%s112_s22 + $0x20] sm:$0xff] (%p28_p3)  ;;  %148 = vst [vmem:[%s109_s23] sm:$0xff] (%p28_p3), %v147_v0  ;;  %v153_v3 = vld [vmem:[%s112_s22 + $0x30] sm:$0xff] (%p28_p3) }
  0x11   : > { %150 = vst [vmem:[%s109_s23 + $0x8] sm:$0xff] %v149_v1 }
  0x12   : > { %152 = vst [vmem:[%s109_s23 + $0x10] sm:$0xff] %v151_v2 }
  0x13   : > { %154 = vst [vmem:[%s109_s23 + $0x18] sm:$0xff] %v153_v3 }
  0x14 PF: > { %p333_p5 = scmp.ge.s32.totalorder %s409_s11, 1  ;;  %p159_p6 = scmp.lt.s32.totalorder %s409_s11, 3 }
  0x16   : > { %p160_p7 = pnand %p333_p5, %p159_p6 }
  0x17   : > { %s166_s24 = sand.u32 (!%p160_p7), 1, %s401_s9   ;;  %s335_s29 = sshll.u32 (!%p160_p7), %s326_s12, 1 }
  0x18   : > { %163 = sbr.rel (%p160_p7) target bundleno = 177 (0xb1), region = 62  ;;  %s334_s25 = sshll.u32 (!%p160_p7), %s166_s24, 5 }
  0x19   : > { %s168_s26 = scalar_lea.vmem (!%p160_p7), [#allocation2], %s334_s25  ;;  %p189_p8 = scmp.lt.s32.totalorder (!%p160_p7), %s335_s29, 3 }
  0x1d   : > { %vm222_vm0 = vcmask 1043456   ;;  %vm223_vm1 = vcmask 1044480   ;;  %v411_v4 = vmov 65535   ;;  %v347_v7 = vld [vmem:[%s168_s26 + $0x10] sm:$0xf]  ;;  %vm218_vm2 = vcmask 203776  }
  0x1e   : > { %v224_v5 = vsel %vm222_vm0, 4294967295, %v411_v4  ;;  %v361_v8 = vld [vmem:[%s168_s26 + $0x14] sm:$0x10]  ;;  %v360_v9 = vld [vmem:[%s168_s26 + $0x14] sm:$0xf]  ;;  %s491_s29 = smov (!%p189_p8, %s335_s29), 3 }
  0x1f   : > { %v225_v6 = vsel %vm223_vm1, %v224_v5, 0  ;;  %v348_v10 = vor.u32 %v361_v8, %v347_v7  ;;  %v349_v11 = vld [vmem:[%s168_s26 + $0x18] sm:$0x10]  ;;  %v339_v13 = vld [vmem:[%s168_s26] sm:$0xf]  ;;  %s336_s30 = sshll.u32 %s491_s29, 2 }
  0x20   : > { %v352_v12 = vor.u32 %v360_v9, %v349_v11  ;;  %v359_v14 = vld [vmem:[%s168_s26 + $0x4] sm:$0xf0]  ;;  %v358_v16 = vld [vmem:[%s168_s26 + $0x4] sm:$0xf]  ;;  %v341_v17 = vld [vmem:[%s168_s26 + $0x8] sm:$0xf0]  ;;  %s192_s5 = scalar_lea.vmem %s486_s2, %s336_s30 }
  0x21   : > { %v227_v15 = vand.u32 %v348_v10, %v225_v6  ;;  %v340_v19 = vor.u32 %v359_v14, %v339_v13  ;;  %v344_v20 = vor.u32 %v358_v16, %v341_v17  ;;  %v195_v21 = vld [vmem:[%s485_s1] sm:$0x3] }
  0x22   : > { %v230_v18 = vand.u32 %v352_v12, %v225_v6 }
  0x23   : > { %238 = vmatpush.bf16.msra.mxu0 %v227_v15 }
  0x24   : > { %251 = vmatpush.bf16.msra.mxu1 %v230_v18 }
  0x27   : > { %239 = vmatpush.bf16.msra.mxu0 %v340_v19 }
  0x28   : > { %252 = vmatpush.bf16.msra.mxu1 %v344_v20 }
  0x2a   : > { %353 = vmatmul.msk.bf16.vlgmr.msra.gmra.mxu0 %vm218_vm2, %v195_v21 }
  0x2b   : > { %354 = vmatmul.msk.bf16.vlgmr.msra.gmra.mxu1 %vm218_vm2, %v195_v21 }
  0xa7   : > { %v241_v22 = vpop.f32.mrf.mxu0 }
  0xa8   : > { %v254_v23 = vpop.f32.mrf.mxu1 }
  0xa9   : > { %v260_v24 = vrot.slane %v254_v23, 4 }
  0xab   : > { %v261_v25 = vsel %vm222_vm0, %v241_v22, %v260_v24 }
  0xac   : > { %263 = vst [vmem:[%s192_s5] sm:$0x77] %v261_v25 }
  0xaf   : > { %v243_v26 = vpop.f32.mrf.mxu0 }
  0xb0   : > { %v256_v27 = vpop.f32.mrf.mxu1 }
  0xb1 PF: > { %p9_p9 = scmp.ge.s32.totalorder %s444_s13, 4   ;;  %s487_s9 = smov %s405_s10 }
  0xb2   : > { %s488_s10 = smov %s453_s16  ;;  %s489_s11 = smov %s444_s13 }
  0xb3   :  { %11 = sbr.rel (!%p9_p9) target bundleno = 2 (0x2), region = 101 }

</bundles_post_ra>
